<compile_context>
chip_gen: v5e
topology: v5e:2x2
jax: 0.10.0
libtpu: 0.0.40
codegen_flags: <defaults>
</compile_context>

<pallas_src>
import functools
import math

import jax
import jax.numpy as jnp
from jax import lax
from jax.experimental import pallas as pl
from jax.experimental.pallas import tpu as pltpu

GEN_EPS = 1e-7   # GENConv message epsilon
LN_EPS = 1e-5    # torch.nn.LayerNorm default eps


# ------------------------------ in-kernel helpers ---------------------------

def _ln(v, g, b, relu=False):
    """LayerNorm over the last dim (f32), optional fused ReLU."""
    mu = jnp.mean(v, axis=-1, keepdims=True)
    vc = v - mu
    var = jnp.mean(vc * vc, axis=-1, keepdims=True)
    y = vc * lax.rsqrt(var + LN_EPS) * g + b
    return jnp.maximum(y, 0.0) if relu else y


# ------------------------------ fused kernel --------------------------------

def _fused_forward_kernel(
        # constant blocks (index never changes -> loaded into VMEM once)
        xr_ref, wn_ref, bn_ref, er_ref, we_ref, be_ref, vn_emb_ref,
        src_ref, gath_ref, sel_ref, invcnt_ref, fin_g_ref, fin_b_ref,
        # per-layer streamed blocks (double-buffered by the BlockSpec pipeline)
        pre_g_ref, pre_b_ref, w1_ref, b1_ref, mlp_g_ref, mlp_b_ref,
        w2_ref, b2_ref,
        # per-layer softmax temperature table (SMEM)
        t_ref,
        # output
        o_ref,
        # VMEM scratch persisting across the layer grid
        x_vmem, ea_vmem, vn_vmem):
    f32, bf16 = jnp.float32, jnp.bfloat16
    l = pl.program_id(0)

    # ---- grid step 0: node/edge encoders + virtual-node init ---------------
    @pl.when(l == 0)
    def _():
        x_vmem[...] = (jnp.dot(xr_ref[...], wn_ref[...],
                               preferred_element_type=f32) + bn_ref[...])
        ea_vmem[...] = (jnp.dot(er_ref[...], we_ref[...],
                                preferred_element_type=f32) + be_ref[...])
        vn_vmem[...] = jnp.broadcast_to(vn_emb_ref[...], vn_vmem.shape)

    # ---- DeepGCNLayer('res+', GENConv) + virtual-node update ---------------
    x = x_vmem[...]
    # res+ pre-transform: h = dropout(relu(norm(x)))  (dropout = identity, eval)
    h = _ln(x, pre_g_ref[0], pre_b_ref[0], relu=True)

    src = src_ref[...]                               # [E,N] bf16 one-hot (source)
    gath = gath_ref[...]                             # [E,N] bf16 one-hot (target)
    x_j = jnp.dot(src, h.astype(bf16), preferred_element_type=f32)       # [E,H]
    msg = jnp.maximum(x_j + ea_vmem[...], 0.0) + GEN_EPS                 # relu(x_j+e)+eps

    # softmax aggregation with learnable temperature t (per layer, from SMEM)
    z = msg * t_ref[l, 0]
    # per-channel global max is constant within every target group, so the
    # softmax is unchanged but exp() cannot overflow
    z = z - jnp.max(z, axis=0, keepdims=True)
    num = jnp.exp(z)                                                     # [E,H]

    def scatter_sum(v):  # sum_{e: tgt(e)=n} v[e] == gath^T @ v (no transpose op)
        return lax.dot_general(gath, v.astype(bf16),
                               dimension_numbers=(((0,), (0,)), ((), ())),
                               preferred_element_type=f32)

    denom_n = scatter_sum(num)                                           # [N,H]
    denom_e = jnp.dot(gath, denom_n.astype(bf16),
                      preferred_element_type=f32)                        # [E,H]
    alpha = num / jnp.maximum(denom_e, 1e-20)
    aggr = scatter_sum(msg * alpha)                                      # [N,H]
    out = aggr + h                                                       # + x_dst

    # GENConv MLP: Linear(H,2H) -> LayerNorm(2H) -> ReLU -> Linear(2H,H)
    y = (jnp.dot(out.astype(bf16), w1_ref[0], preferred_element_type=f32)
         + b1_ref[0])
    y = _ln(y, mlp_g_ref[0], mlp_b_ref[0], relu=True)
    conv_out = (jnp.dot(y.astype(bf16), w2_ref[0], preferred_element_type=f32)
                + b2_ref[0])

    x_new = x + conv_out                                                 # res+

    # virtual node: vn += scatter_mean(x_new, batch); x_new += vn[batch]
    sel = sel_ref[...]                                                   # [G,N]
    graph_mean = jnp.dot(sel, x_new.astype(bf16),
                         preferred_element_type=f32) * invcnt_ref[...]   # [G,H]
    vn_new = vn_vmem[...] + graph_mean
    vn_per_node = lax.dot_general(sel, vn_new.astype(bf16),
                                  dimension_numbers=(((0,), (0,)), ((), ())),
                                  preferred_element_type=f32)            # [N,H]
    x_vmem[...] = x_new + vn_per_node
    vn_vmem[...] = vn_new

    # ---- last grid step: layers[0].act(layers[0].norm(x)) + mean-pool ------
    @pl.when(l == pl.num_programs(0) - 1)
    def _():
        hf = _ln(x_vmem[...], fin_g_ref[...], fin_b_ref[...], relu=True)
        o_ref[...] = (jnp.dot(sel_ref[...], hf.astype(bf16),
                              preferred_element_type=f32) * invcnt_ref[...])


# ------------------------------ call wrapper ---------------------------------

def _virtual_node_gnn_pallas(x_raw, edge_attr_raw, src_oh, gath_oh, sel, inv_cnt,
                             node_enc, edge_enc, vn_emb, fin_g, fin_b,
                             pre_g, pre_b, w1, b1, mlp_g, mlp_b, w2, b2, t_tbl,
                             *, num_graphs):
    n, e = x_raw.shape[0], edge_attr_raw.shape[0]
    hidden = node_enc[0].shape[1]
    n_act = pre_g.shape[0]                     # number of executed GENConv blocks

    def const(shape):                          # full-array block, constant index
        return pl.BlockSpec(shape, lambda li: (0,) * len(shape))

    def per_layer(tail):                       # stacked [L,*tail], streamed per layer
        nd = len(tail)
        return pl.BlockSpec((1,) + tail, lambda li: (li,) + (0,) * nd)

    # TODO(synk): for large graphs this single-block kernel needs an edge/node
    # tiled grid with scalar-prefetched edge indices instead of dense one-hots.
    grid_spec = pltpu.PrefetchScalarGridSpec(
        num_scalar_prefetch=0,
        grid=(n_act,),
        in_specs=[
            const((n, 9)), const((9, hidden)), const((1, hidden)),
            const((e, 3)), const((3, hidden)), const((1, hidden)),
            const((1, hidden)),
            const((e, n)), const((e, n)),
            const((num_graphs, n)), const((num_graphs, 1)),
            const((1, hidden)), const((1, hidden)),
            per_layer((1, hidden)), per_layer((1, hidden)),
            per_layer((hidden, 2 * hidden)), per_layer((1, 2 * hidden)),
            per_layer((1, 2 * hidden)), per_layer((1, 2 * hidden)),
            per_layer((2 * hidden, hidden)), per_layer((1, hidden)),
            pl.BlockSpec(memory_space=pltpu.MemorySpace.SMEM),
        ],
        out_specs=pl.BlockSpec((num_graphs, hidden), lambda li: (0, 0)),
        scratch_shapes=[
            pltpu.VMEM((n, hidden), jnp.float32),           # node features
            pltpu.VMEM((e, hidden), jnp.float32),           # encoded edge_attr
            pltpu.VMEM((num_graphs, hidden), jnp.float32),  # virtual-node state
        ],
    )
    return pl.pallas_call(
        _fused_forward_kernel,
        out_shape=jax.ShapeDtypeStruct((num_graphs, hidden), jnp.float32),
        grid_spec=grid_spec,
        compiler_params=pltpu.CompilerParams(dimension_semantics=("arbitrary",)),
    )(x_raw, node_enc[0], node_enc[1], edge_attr_raw, edge_enc[0], edge_enc[1],
      vn_emb, src_oh, gath_oh, sel, inv_cnt, fin_g, fin_b,
      pre_g, pre_b, w1, b1, mlp_g, mlp_b, w2, b2, t_tbl)


# --------------------------- parameters / forward ----------------------------

def _dense_init(key, fan_in, fan_out):
    k1, k2 = jax.random.split(key)
    bound = 1.0 / math.sqrt(fan_in)
    w = jax.random.uniform(k1, (fan_in, fan_out), jnp.float32, -bound, bound)
    b = jax.random.uniform(k2, (1, fan_out), jnp.float32, -bound, bound)
    return w, b


def init_params(key, hidden, num_layers):
    keys = jax.random.split(key, 2 + 2 * num_layers)
    params = {
        "node_enc": _dense_init(keys[0], 9, hidden),
        "edge_enc": _dense_init(keys[1], 3, hidden),
        "vn_emb": jnp.zeros((1, hidden), jnp.float32),   # virtual_node_emb (zeros)
        "layers": [],
    }
    for i in range(num_layers):
        k1, k2 = keys[2 + 2 * i], keys[3 + 2 * i]
        w1, b1 = _dense_init(k1, hidden, 2 * hidden)          # GENConv MLP lin1
        w2, b2 = _dense_init(k2, 2 * hidden, hidden)          # GENConv MLP lin2
        params["layers"].append({
            # DeepGCNLayer LayerNorm(hidden) (layers[0]'s is only used at the end)
            "pre_g": jnp.ones((1, hidden), jnp.float32),
            "pre_b": jnp.zeros((1, hidden), jnp.float32),
            # GENConv (layers[0]'s conv params exist but never run, matching the
            # PyTorch module where only layers[1:] execute)
            "t": jnp.ones((1, 1), jnp.float32),                # learn_t init = 1.0
            "w1": w1, "b1": b1,
            "mlp_g": jnp.ones((1, 2 * hidden), jnp.float32),
            "mlp_b": jnp.zeros((1, 2 * hidden), jnp.float32),
            "w2": w2, "b2": b2,
        })
    return params


@functools.partial(jax.jit, static_argnames=("num_graphs",))
def virtual_node_gnn_forward(params, x_raw, edge_index, edge_attr_raw, batch,
                             *, num_graphs):
    n = x_raw.shape[0]
    layers = params["layers"]
    act = layers[1:]                    # only layers[1:] run in the PyTorch loop
    # TODO(synk): num_layers == 1 (zero GENConv blocks) would need a separate
    # encode+pool-only kernel; not implemented.
    assert len(act) >= 1

    bf16 = jnp.bfloat16
    # bf16 selector matrices (exact 0/1): gather/scatter + graph pooling.
    src_oh = jax.nn.one_hot(edge_index[0], n, dtype=bf16)    # [E, N]
    gath_oh = jax.nn.one_hot(edge_index[1], n, dtype=bf16)   # [E, N]
    sel = (batch[None, :] ==
           jnp.arange(num_graphs, dtype=batch.dtype)[:, None]).astype(bf16)
    counts = jnp.sum(sel.astype(jnp.float32), axis=1, keepdims=True)
    inv_cnt = 1.0 / jnp.maximum(counts, 1.0)                 # guard empty graphs

    stack = lambda key: jnp.stack([lp[key] for lp in act], axis=0)
    w1 = stack("w1").astype(bf16)       # streamed weights pre-cast: half the DMA,
    w2 = stack("w2").astype(bf16)       # numerically identical to in-kernel cast
    t_tbl = stack("t").reshape(len(act), 1)

    return _virtual_node_gnn_pallas(
        x_raw.astype(jnp.float32), edge_attr_raw.astype(jnp.float32),
        src_oh, gath_oh, sel, inv_cnt,
        params["node_enc"], params["edge_enc"], params["vn_emb"],
        layers[0]["pre_g"], layers[0]["pre_b"],
        stack("pre_g"), stack("pre_b"), w1, stack("b1"),
        stack("mlp_g"), stack("mlp_b"), w2, stack("b2"), t_tbl,
        num_graphs=num_graphs)


# TODO(synk): dropout (p=0.1) is eval-mode identity; training-mode stochastic
# masking and GENConv gradient paths (learn_t backward) are out of scope for a
# forward-only kernel.


if __name__ == "__main__":
    HIDDEN = 128       # lane-dense channel width (multiple of 128)
    NUM_LAYERS = 3
    N_NODES = 32
    N_EDGES = 64
    N_GRAPHS = 2

    key = jax.random.PRNGKey(0)
    kp, kx, ke, ks, kt = jax.random.split(key, 5)

    params = init_params(kp, HIDDEN, NUM_LAYERS)

    x_raw = jax.random.normal(kx, (N_NODES, 9), jnp.float32)
    edge_attr_raw = jax.random.normal(ke, (N_EDGES, 3), jnp.float32)
    edge_src = jax.random.randint(ks, (N_EDGES,), 0, N_NODES, jnp.int32)
    edge_tgt = jax.random.randint(kt, (N_EDGES,), 0, N_NODES, jnp.int32)
    edge_index = jnp.stack([edge_src, edge_tgt], axis=0)             # [2, E]
    batch = jnp.concatenate([jnp.zeros((N_NODES // 2,), jnp.int32),
                             jnp.ones((N_NODES - N_NODES // 2,), jnp.int32)])

    out = virtual_node_gnn_forward(params, x_raw, edge_index, edge_attr_raw,
                                   batch, num_graphs=N_GRAPHS)
    out = jax.block_until_ready(out)
    assert out.shape == (N_GRAPHS, HIDDEN)
    assert bool(jnp.all(jnp.isfinite(out)))
    print("KERNEL_OK")
</pallas_src>

<mosaic_0001>
module attributes {stable_mosaic.version = 11 : i64} {
  func.func @_fused_forward_kernel(%arg0: i32, %arg1: memref<32x9xf32, #tpu.memory_space<vmem>>, %arg2: memref<9x128xf32, #tpu.memory_space<vmem>>, %arg3: memref<1x128xf32, #tpu.memory_space<vmem>>, %arg4: memref<64x3xf32, #tpu.memory_space<vmem>>, %arg5: memref<3x128xf32, #tpu.memory_space<vmem>>, %arg6: memref<1x128xf32, #tpu.memory_space<vmem>>, %arg7: memref<1x128xf32, #tpu.memory_space<vmem>>, %arg8: memref<64x32xbf16, #tpu.memory_space<vmem>>, %arg9: memref<64x32xbf16, #tpu.memory_space<vmem>>, %arg10: memref<2x32xbf16, #tpu.memory_space<vmem>>, %arg11: memref<2x1xf32, #tpu.memory_space<vmem>>, %arg12: memref<1x128xf32, #tpu.memory_space<vmem>>, %arg13: memref<1x128xf32, #tpu.memory_space<vmem>>, %arg14: memref<1x1x128xf32, #tpu.memory_space<vmem>>, %arg15: memref<1x1x128xf32, #tpu.memory_space<vmem>>, %arg16: memref<1x128x256xbf16, #tpu.memory_space<vmem>>, %arg17: memref<1x1x256xf32, #tpu.memory_space<vmem>>, %arg18: memref<1x1x256xf32, #tpu.memory_space<vmem>>, %arg19: memref<1x1x256xf32, #tpu.memory_space<vmem>>, %arg20: memref<1x256x128xbf16, #tpu.memory_space<vmem>>, %arg21: memref<1x1x128xf32, #tpu.memory_space<vmem>>, %arg22: memref<2x1xf32, #tpu.memory_space<smem>>, %arg23: memref<2x128xf32, #tpu.memory_space<vmem>>, %arg24: memref<32x128xf32, #tpu.memory_space<vmem>>, %arg25: memref<64x128xf32, #tpu.memory_space<vmem>>, %arg26: memref<2x128xf32, #tpu.memory_space<vmem>>) attributes {dimension_semantics = [#tpu.dimension_semantics<arbitrary>], iteration_bounds = array<i64: 2>, scalar_prefetch = 0 : i64, scratch_operands = 3 : i64, tpu.core_type = #tpu.core_type<tc>, window_params = [{pipeline_mode = #tpu.pipeline_mode<synchronous>, transform_indices = @transform_0, window_bounds = array<i64: 32, 9>}, {pipeline_mode = #tpu.pipeline_mode<synchronous>, transform_indices = @transform_1, window_bounds = array<i64: 9, 128>}, {pipeline_mode = #tpu.pipeline_mode<synchronous>, transform_indices = @transform_2, window_bounds = array<i64: 1, 128>}, {pipeline_mode = #tpu.pipeline_mode<synchronous>, transform_indices = @transform_3, window_bounds = array<i64: 64, 3>}, {pipeline_mode = #tpu.pipeline_mode<synchronous>, transform_indices = @transform_4, window_bounds = array<i64: 3, 128>}, {pipeline_mode = #tpu.pipeline_mode<synchronous>, transform_indices = @transform_5, window_bounds = array<i64: 1, 128>}, {pipeline_mode = #tpu.pipeline_mode<synchronous>, transform_indices = @transform_6, window_bounds = array<i64: 1, 128>}, {pipeline_mode = #tpu.pipeline_mode<synchronous>, transform_indices = @transform_7, window_bounds = array<i64: 64, 32>}, {pipeline_mode = #tpu.pipeline_mode<synchronous>, transform_indices = @transform_8, window_bounds = array<i64: 64, 32>}, {pipeline_mode = #tpu.pipeline_mode<synchronous>, transform_indices = @transform_9, window_bounds = array<i64: 2, 32>}, {pipeline_mode = #tpu.pipeline_mode<synchronous>, transform_indices = @transform_10, window_bounds = array<i64: 2, 1>}, {pipeline_mode = #tpu.pipeline_mode<synchronous>, transform_indices = @transform_11, window_bounds = array<i64: 1, 128>}, {pipeline_mode = #tpu.pipeline_mode<synchronous>, transform_indices = @transform_12, window_bounds = array<i64: 1, 128>}, {transform_indices = @transform_13, window_bounds = array<i64: 1, 1, 128>}, {transform_indices = @transform_14, window_bounds = array<i64: 1, 1, 128>}, {transform_indices = @transform_15, window_bounds = array<i64: 1, 128, 256>}, {transform_indices = @transform_16, window_bounds = array<i64: 1, 1, 256>}, {transform_indices = @transform_17, window_bounds = array<i64: 1, 1, 256>}, {transform_indices = @transform_18, window_bounds = array<i64: 1, 1, 256>}, {transform_indices = @transform_19, window_bounds = array<i64: 1, 256, 128>}, {transform_indices = @transform_20, window_bounds = array<i64: 1, 1, 128>}, {transform_indices = @transform_21, window_bounds = array<i64: 2, 1>}, {pipeline_mode = #tpu.pipeline_mode<synchronous>, transform_indices = @transform_22, window_bounds = array<i64: 2, 128>}]} {
    %c0_i32 = arith.constant 0 : i32
    %0 = arith.cmpi eq, %arg0, %c0_i32 : i32
    %1 = arith.extui %0 : i1 to i32
    %c0_i32_0 = arith.constant 0 : i32
    %2 = arith.cmpi ne, %1, %c0_i32_0 : i32
    scf.if %2 {
      %c0_67 = arith.constant 0 : index
      %c0_68 = arith.constant 0 : index
      %119 = vector.load %arg1[%c0_67, %c0_68] : memref<32x9xf32, #tpu.memory_space<vmem>>, vector<32x9xf32>
      %c0_69 = arith.constant 0 : index
      %c0_70 = arith.constant 0 : index
      %120 = vector.load %arg2[%c0_69, %c0_70] : memref<9x128xf32, #tpu.memory_space<vmem>>, vector<9x128xf32>
      %cst_71 = arith.constant dense<0.000000e+00> : vector<32x128xf32>
      %121 = tpu.matmul %119, %120, %cst_71 {dimension_numbers = #tpu.dot_dimension_numbers<[1], [0], [0], [1], [0, 0, 1, 1], [], []>} : vector<32x9xf32>, vector<9x128xf32>, vector<32x128xf32> -> vector<32x128xf32>
      %c0_72 = arith.constant 0 : index
      %c0_73 = arith.constant 0 : index
      %122 = vector.load %arg3[%c0_72, %c0_73] : memref<1x128xf32, #tpu.memory_space<vmem>>, vector<1x128xf32>
      %123 = vector.broadcast %122 : vector<1x128xf32> to vector<32x128xf32>
      %124 = arith.addf %121, %123 : vector<32x128xf32>
      %c0_74 = arith.constant 0 : index
      %c0_75 = arith.constant 0 : index
      %125 = vector.load %arg24[%c0_74, %c0_75] : memref<32x128xf32, #tpu.memory_space<vmem>>, vector<32x128xf32>
      tpu.vector_store %arg24[%c0_74, %c0_75], %124 {strides = array<i32>} : memref<32x128xf32, #tpu.memory_space<vmem>>, vector<32x128xf32>,
      %c0_76 = arith.constant 0 : index
      %c0_77 = arith.constant 0 : index
      %126 = vector.load %arg4[%c0_76, %c0_77] : memref<64x3xf32, #tpu.memory_space<vmem>>, vector<64x3xf32>
      %c0_78 = arith.constant 0 : index
      %c0_79 = arith.constant 0 : index
      %127 = vector.load %arg5[%c0_78, %c0_79] : memref<3x128xf32, #tpu.memory_space<vmem>>, vector<3x128xf32>
      %cst_80 = arith.constant dense<0.000000e+00> : vector<64x128xf32>
      %128 = tpu.matmul %126, %127, %cst_80 {dimension_numbers = #tpu.dot_dimension_numbers<[1], [0], [0], [1], [0, 0, 1, 1], [], []>} : vector<64x3xf32>, vector<3x128xf32>, vector<64x128xf32> -> vector<64x128xf32>
      %c0_81 = arith.constant 0 : index
      %c0_82 = arith.constant 0 : index
      %129 = vector.load %arg6[%c0_81, %c0_82] : memref<1x128xf32, #tpu.memory_space<vmem>>, vector<1x128xf32>
      %130 = vector.broadcast %129 : vector<1x128xf32> to vector<64x128xf32>
      %131 = arith.addf %128, %130 : vector<64x128xf32>
      %c0_83 = arith.constant 0 : index
      %c0_84 = arith.constant 0 : index
      %132 = vector.load %arg25[%c0_83, %c0_84] : memref<64x128xf32, #tpu.memory_space<vmem>>, vector<64x128xf32>
      tpu.vector_store %arg25[%c0_83, %c0_84], %131 {strides = array<i32>} : memref<64x128xf32, #tpu.memory_space<vmem>>, vector<64x128xf32>,
      %c0_85 = arith.constant 0 : index
      %c0_86 = arith.constant 0 : index
      %133 = vector.load %arg7[%c0_85, %c0_86] : memref<1x128xf32, #tpu.memory_space<vmem>>, vector<1x128xf32>
      %134 = vector.shape_cast %133 : vector<1x128xf32> to vector<1x128xf32>
      %135 = vector.broadcast %134 : vector<1x128xf32> to vector<2x128xf32>
      %c0_87 = arith.constant 0 : index
      %c0_88 = arith.constant 0 : index
      %136 = vector.load %arg26[%c0_87, %c0_88] : memref<2x128xf32, #tpu.memory_space<vmem>>, vector<2x128xf32>
      tpu.vector_store %arg26[%c0_87, %c0_88], %135 {strides = array<i32>} : memref<2x128xf32, #tpu.memory_space<vmem>>, vector<2x128xf32>,
    } else {
    }
    %c0 = arith.constant 0 : index
    %c0_1 = arith.constant 0 : index
    %3 = vector.load %arg24[%c0, %c0_1] : memref<32x128xf32, #tpu.memory_space<vmem>>, vector<32x128xf32>
    %c0_2 = arith.constant 0 : index
    %c0_3 = arith.constant 0 : index
    %c0_4 = arith.constant 0 : index
    %4 = vector.load %arg14[%c0_2, %c0_3, %c0_4] : memref<1x1x128xf32, #tpu.memory_space<vmem>>, vector<1x1x128xf32>
    %5 = vector.shape_cast %4 : vector<1x1x128xf32> to vector<1x128xf32>
    %c0_5 = arith.constant 0 : index
    %c0_6 = arith.constant 0 : index
    %c0_7 = arith.constant 0 : index
    %6 = vector.load %arg15[%c0_5, %c0_6, %c0_7] : memref<1x1x128xf32, #tpu.memory_space<vmem>>, vector<1x1x128xf32>
    %7 = vector.shape_cast %6 : vector<1x1x128xf32> to vector<1x128xf32>
    %cst = arith.constant dense<0.000000e+00> : vector<32xf32>
    %8 = vector.multi_reduction <add>, %3, %cst [1] : vector<32x128xf32> to vector<32xf32>
    %9 = vector.shape_cast %8 : vector<32xf32> to vector<32x1xf32>
    %cst_8 = arith.constant 1.280000e+02 : f32
    %10 = vector.broadcast %cst_8 : f32 to vector<32x1xf32>
    %11 = arith.divf %9, %10 : vector<32x1xf32>
    %12 = vector.broadcast %11 : vector<32x1xf32> to vector<32x128xf32>
    %13 = arith.subf %3, %12 : vector<32x128xf32>
    %14 = arith.mulf %13, %13 : vector<32x128xf32>
    %cst_9 = arith.constant dense<0.000000e+00> : vector<32xf32>
    %15 = vector.multi_reduction <add>, %14, %cst_9 [1] : vector<32x128xf32> to vector<32xf32>
    %16 = vector.shape_cast %15 : vector<32xf32> to vector<32x1xf32>
    %cst_10 = arith.constant 1.280000e+02 : f32
    %17 = vector.broadcast %cst_10 : f32 to vector<32x1xf32>
    %18 = arith.divf %16, %17 : vector<32x1xf32>
    %cst_11 = arith.constant 9.99999974E-6 : f32
    %19 = vector.broadcast %cst_11 : f32 to vector<32x1xf32>
    %20 = arith.addf %18, %19 : vector<32x1xf32>
    %21 = math.rsqrt %20 : vector<32x1xf32>
    %22 = vector.broadcast %21 : vector<32x1xf32> to vector<32x128xf32>
    %23 = arith.mulf %13, %22 : vector<32x128xf32>
    %24 = vector.broadcast %5 : vector<1x128xf32> to vector<32x128xf32>
    %25 = arith.mulf %23, %24 : vector<32x128xf32>
    %26 = vector.broadcast %7 : vector<1x128xf32> to vector<32x128xf32>
    %27 = arith.addf %25, %26 : vector<32x128xf32>
    %cst_12 = arith.constant 0.000000e+00 : f32
    %28 = vector.broadcast %cst_12 : f32 to vector<32x128xf32>
    %29 = arith.maximumf %27, %28 : vector<32x128xf32>
    %c0_13 = arith.constant 0 : index
    %c0_14 = arith.constant 0 : index
    %30 = vector.load %arg8[%c0_13, %c0_14] : memref<64x32xbf16, #tpu.memory_space<vmem>>, vector<64x32xbf16>
    %c0_15 = arith.constant 0 : index
    %c0_16 = arith.constant 0 : index
    %31 = vector.load %arg9[%c0_15, %c0_16] : memref<64x32xbf16, #tpu.memory_space<vmem>>, vector<64x32xbf16>
    %32 = arith.truncf %29 : vector<32x128xf32> to vector<32x128xbf16>
    %cst_17 = arith.constant dense<0.000000e+00> : vector<64x128xf32>
    %33 = tpu.matmul %30, %32, %cst_17 {dimension_numbers = #tpu.dot_dimension_numbers<[1], [0], [0], [1], [0, 0, 1, 1], [], []>} : vector<64x32xbf16>, vector<32x128xbf16>, vector<64x128xf32> -> vector<64x128xf32>
    %c0_18 = arith.constant 0 : index
    %c0_19 = arith.constant 0 : index
    %34 = vector.load %arg25[%c0_18, %c0_19] : memref<64x128xf32, #tpu.memory_space<vmem>>, vector<64x128xf32>
    %35 = arith.addf %33, %34 : vector<64x128xf32>
    %cst_20 = arith.constant 0.000000e+00 : f32
    %36 = vector.broadcast %cst_20 : f32 to vector<64x128xf32>
    %37 = arith.maximumf %35, %36 : vector<64x128xf32>
    %cst_21 = arith.constant 1.000000e-07 : f32
    %38 = vector.broadcast %cst_21 : f32 to vector<64x128xf32>
    %39 = arith.addf %37, %38 : vector<64x128xf32>
    %40 = arith.index_cast %arg0 : i32 to index
    %c0_22 = arith.constant 0 : index
    %41 = memref.load %arg22[%40, %c0_22] : memref<2x1xf32, #tpu.memory_space<smem>>
    %42 = vector.broadcast %41 : f32 to vector<64x128xf32>
    %43 = arith.mulf %39, %42 : vector<64x128xf32>
    %cst_23 = arith.constant dense<0xFF800000> : vector<128xf32>
    %44 = vector.multi_reduction <maximumf>, %43, %cst_23 [0] : vector<64x128xf32> to vector<128xf32>
    %45 = vector.shape_cast %44 : vector<128xf32> to vector<1x128xf32>
    %46 = vector.broadcast %45 : vector<1x128xf32> to vector<64x128xf32>
    %47 = arith.subf %43, %46 : vector<64x128xf32>
    %48 = math.exp %47 : vector<64x128xf32>
    %49 = arith.truncf %48 : vector<64x128xf32> to vector<64x128xbf16>
    %cst_24 = arith.constant dense<0.000000e+00> : vector<32x128xf32>
    %50 = tpu.matmul %31, %49, %cst_24 {dimension_numbers = #tpu.dot_dimension_numbers<[0], [0], [1], [1], [0, 1, 1, 1], [], []>} : vector<64x32xbf16>, vector<64x128xbf16>, vector<32x128xf32> -> vector<32x128xf32>
    %51 = arith.truncf %50 : vector<32x128xf32> to vector<32x128xbf16>
    %cst_25 = arith.constant dense<0.000000e+00> : vector<64x128xf32>
    %52 = tpu.matmul %31, %51, %cst_25 {dimension_numbers = #tpu.dot_dimension_numbers<[1], [0], [0], [1], [0, 0, 1, 1], [], []>} : vector<64x32xbf16>, vector<32x128xbf16>, vector<64x128xf32> -> vector<64x128xf32>
    %cst_26 = arith.constant 9.99999968E-21 : f32
    %53 = vector.broadcast %cst_26 : f32 to vector<64x128xf32>
    %54 = arith.maximumf %52, %53 : vector<64x128xf32>
    %55 = arith.divf %48, %54 : vector<64x128xf32>
    %56 = arith.mulf %39, %55 : vector<64x128xf32>
    %57 = arith.truncf %56 : vector<64x128xf32> to vector<64x128xbf16>
    %cst_27 = arith.constant dense<0.000000e+00> : vector<32x128xf32>
    %58 = tpu.matmul %31, %57, %cst_27 {dimension_numbers = #tpu.dot_dimension_numbers<[0], [0], [1], [1], [0, 1, 1, 1], [], []>} : vector<64x32xbf16>, vector<64x128xbf16>, vector<32x128xf32> -> vector<32x128xf32>
    %59 = arith.addf %58, %29 : vector<32x128xf32>
    %60 = arith.truncf %59 : vector<32x128xf32> to vector<32x128xbf16>
    %c0_28 = arith.constant 0 : index
    %c0_29 = arith.constant 0 : index
    %c0_30 = arith.constant 0 : index
    %61 = vector.load %arg16[%c0_28, %c0_29, %c0_30] : memref<1x128x256xbf16, #tpu.memory_space<vmem>>, vector<1x128x256xbf16>
    %62 = vector.shape_cast %61 : vector<1x128x256xbf16> to vector<128x256xbf16>
    %cst_31 = arith.constant dense<0.000000e+00> : vector<32x256xf32>
    %63 = tpu.matmul %60, %62, %cst_31 {dimension_numbers = #tpu.dot_dimension_numbers<[1], [0], [0], [1], [0, 0, 1, 1], [], []>} : vector<32x128xbf16>, vector<128x256xbf16>, vector<32x256xf32> -> vector<32x256xf32>
    %c0_32 = arith.constant 0 : index
    %c0_33 = arith.constant 0 : index
    %c0_34 = arith.constant 0 : index
    %64 = vector.load %arg17[%c0_32, %c0_33, %c0_34] : memref<1x1x256xf32, #tpu.memory_space<vmem>>, vector<1x1x256xf32>
    %65 = vector.shape_cast %64 : vector<1x1x256xf32> to vector<1x256xf32>
    %66 = vector.broadcast %65 : vector<1x256xf32> to vector<32x256xf32>
    %67 = arith.addf %63, %66 : vector<32x256xf32>
    %c0_35 = arith.constant 0 : index
    %c0_36 = arith.constant 0 : index
    %c0_37 = arith.constant 0 : index
    %68 = vector.load %arg18[%c0_35, %c0_36, %c0_37] : memref<1x1x256xf32, #tpu.memory_space<vmem>>, vector<1x1x256xf32>
    %69 = vector.shape_cast %68 : vector<1x1x256xf32> to vector<1x256xf32>
    %c0_38 = arith.constant 0 : index
    %c0_39 = arith.constant 0 : index
    %c0_40 = arith.constant 0 : index
    %70 = vector.load %arg19[%c0_38, %c0_39, %c0_40] : memref<1x1x256xf32, #tpu.memory_space<vmem>>, vector<1x1x256xf32>
    %71 = vector.shape_cast %70 : vector<1x1x256xf32> to vector<1x256xf32>
    %cst_41 = arith.constant dense<0.000000e+00> : vector<32xf32>
    %72 = vector.multi_reduction <add>, %67, %cst_41 [1] : vector<32x256xf32> to vector<32xf32>
    %73 = vector.shape_cast %72 : vector<32xf32> to vector<32x1xf32>
    %cst_42 = arith.constant 2.560000e+02 : f32
    %74 = vector.broadcast %cst_42 : f32 to vector<32x1xf32>
    %75 = arith.divf %73, %74 : vector<32x1xf32>
    %76 = vector.broadcast %75 : vector<32x1xf32> to vector<32x256xf32>
    %77 = arith.subf %67, %76 : vector<32x256xf32>
    %78 = arith.mulf %77, %77 : vector<32x256xf32>
    %cst_43 = arith.constant dense<0.000000e+00> : vector<32xf32>
    %79 = vector.multi_reduction <add>, %78, %cst_43 [1] : vector<32x256xf32> to vector<32xf32>
    %80 = vector.shape_cast %79 : vector<32xf32> to vector<32x1xf32>
    %cst_44 = arith.constant 2.560000e+02 : f32
    %81 = vector.broadcast %cst_44 : f32 to vector<32x1xf32>
    %82 = arith.divf %80, %81 : vector<32x1xf32>
    %cst_45 = arith.constant 9.99999974E-6 : f32
    %83 = vector.broadcast %cst_45 : f32 to vector<32x1xf32>
    %84 = arith.addf %82, %83 : vector<32x1xf32>
    %85 = math.rsqrt %84 : vector<32x1xf32>
    %86 = vector.broadcast %85 : vector<32x1xf32> to vector<32x256xf32>
    %87 = arith.mulf %77, %86 : vector<32x256xf32>
    %88 = vector.broadcast %69 : vector<1x256xf32> to vector<32x256xf32>
    %89 = arith.mulf %87, %88 : vector<32x256xf32>
    %90 = vector.broadcast %71 : vector<1x256xf32> to vector<32x256xf32>
    %91 = arith.addf %89, %90 : vector<32x256xf32>
    %cst_46 = arith.constant 0.000000e+00 : f32
    %92 = vector.broadcast %cst_46 : f32 to vector<32x256xf32>
    %93 = arith.maximumf %91, %92 : vector<32x256xf32>
    %94 = arith.truncf %93 : vector<32x256xf32> to vector<32x256xbf16>
    %c0_47 = arith.constant 0 : index
    %c0_48 = arith.constant 0 : index
    %c0_49 = arith.constant 0 : index
    %95 = vector.load %arg20[%c0_47, %c0_48, %c0_49] : memref<1x256x128xbf16, #tpu.memory_space<vmem>>, vector<1x256x128xbf16>
    %96 = vector.shape_cast %95 : vector<1x256x128xbf16> to vector<256x128xbf16>
    %cst_50 = arith.constant dense<0.000000e+00> : vector<32x128xf32>
    %97 = tpu.matmul %94, %96, %cst_50 {dimension_numbers = #tpu.dot_dimension_numbers<[1], [0], [0], [1], [0, 0, 1, 1], [], []>} : vector<32x256xbf16>, vector<256x128xbf16>, vector<32x128xf32> -> vector<32x128xf32>
    %c0_51 = arith.constant 0 : index
    %c0_52 = arith.constant 0 : index
    %c0_53 = arith.constant 0 : index
    %98 = vector.load %arg21[%c0_51, %c0_52, %c0_53] : memref<1x1x128xf32, #tpu.memory_space<vmem>>, vector<1x1x128xf32>
    %99 = vector.shape_cast %98 : vector<1x1x128xf32> to vector<1x128xf32>
    %100 = vector.broadcast %99 : vector<1x128xf32> to vector<32x128xf32>
    %101 = arith.addf %97, %100 : vector<32x128xf32>
    %102 = arith.addf %3, %101 : vector<32x128xf32>
    %c0_54 = arith.constant 0 : index
    %c0_55 = arith.constant 0 : index
    %103 = vector.load %arg10[%c0_54, %c0_55] : memref<2x32xbf16, #tpu.memory_space<vmem>>, vector<2x32xbf16>
    %104 = arith.truncf %102 : vector<32x128xf32> to vector<32x128xbf16>
    %cst_56 = arith.constant dense<0.000000e+00> : vector<2x128xf32>
    %105 = tpu.matmul %103, %104, %cst_56 {dimension_numbers = #tpu.dot_dimension_numbers<[1], [0], [0], [1], [0, 0, 1, 1], [], []>} : vector<2x32xbf16>, vector<32x128xbf16>, vector<2x128xf32> -> vector<2x128xf32>
    %c0_57 = arith.constant 0 : index
    %c0_58 = arith.constant 0 : index
    %106 = vector.load %arg11[%c0_57, %c0_58] : memref<2x1xf32, #tpu.memory_space<vmem>>, vector<2x1xf32>
    %107 = vector.broadcast %106 : vector<2x1xf32> to vector<2x128xf32>
    %108 = arith.mulf %105, %107 : vector<2x128xf32>
    %c0_59 = arith.constant 0 : index
    %c0_60 = arith.constant 0 : index
    %109 = vector.load %arg26[%c0_59, %c0_60] : memref<2x128xf32, #tpu.memory_space<vmem>>, vector<2x128xf32>
    %110 = arith.addf %109, %108 : vector<2x128xf32>
    %111 = arith.truncf %110 : vector<2x128xf32> to vector<2x128xbf16>
    %cst_61 = arith.constant dense<0.000000e+00> : vector<32x128xf32>
    %112 = tpu.matmul %103, %111, %cst_61 {dimension_numbers = #tpu.dot_dimension_numbers<[0], [0], [1], [1], [0, 1, 1, 1], [], []>} : vector<2x32xbf16>, vector<2x128xbf16>, vector<32x128xf32> -> vector<32x128xf32>
    %113 = arith.addf %102, %112 : vector<32x128xf32>
    %c0_62 = arith.constant 0 : index
    %c0_63 = arith.constant 0 : index
    %114 = vector.load %arg24[%c0_62, %c0_63] : memref<32x128xf32, #tpu.memory_space<vmem>>, vector<32x128xf32>
    tpu.vector_store %arg24[%c0_62, %c0_63], %113 {strides = array<i32>} : memref<32x128xf32, #tpu.memory_space<vmem>>, vector<32x128xf32>,
    %c0_64 = arith.constant 0 : index
    %c0_65 = arith.constant 0 : index
    %115 = vector.load %arg26[%c0_64, %c0_65] : memref<2x128xf32, #tpu.memory_space<vmem>>, vector<2x128xf32>
    tpu.vector_store %arg26[%c0_64, %c0_65], %110 {strides = array<i32>} : memref<2x128xf32, #tpu.memory_space<vmem>>, vector<2x128xf32>,
    %c1_i32 = arith.constant 1 : i32
    %116 = arith.cmpi eq, %arg0, %c1_i32 : i32
    %117 = arith.extui %116 : i1 to i32
    %c0_i32_66 = arith.constant 0 : i32
    %118 = arith.cmpi ne, %117, %c0_i32_66 : i32
    scf.if %118 {
      %c0_67 = arith.constant 0 : index
      %c0_68 = arith.constant 0 : index
      %119 = vector.load %arg24[%c0_67, %c0_68] : memref<32x128xf32, #tpu.memory_space<vmem>>, vector<32x128xf32>
      %c0_69 = arith.constant 0 : index
      %c0_70 = arith.constant 0 : index
      %120 = vector.load %arg12[%c0_69, %c0_70] : memref<1x128xf32, #tpu.memory_space<vmem>>, vector<1x128xf32>
      %c0_71 = arith.constant 0 : index
      %c0_72 = arith.constant 0 : index
      %121 = vector.load %arg13[%c0_71, %c0_72] : memref<1x128xf32, #tpu.memory_space<vmem>>, vector<1x128xf32>
      %cst_73 = arith.constant dense<0.000000e+00> : vector<32xf32>
      %122 = vector.multi_reduction <add>, %119, %cst_73 [1] : vector<32x128xf32> to vector<32xf32>
      %123 = vector.shape_cast %122 : vector<32xf32> to vector<32x1xf32>
      %cst_74 = arith.constant 1.280000e+02 : f32
      %124 = vector.broadcast %cst_74 : f32 to vector<32x1xf32>
      %125 = arith.divf %123, %124 : vector<32x1xf32>
      %126 = vector.broadcast %125 : vector<32x1xf32> to vector<32x128xf32>
      %127 = arith.subf %119, %126 : vector<32x128xf32>
      %128 = arith.mulf %127, %127 : vector<32x128xf32>
      %cst_75 = arith.constant dense<0.000000e+00> : vector<32xf32>
      %129 = vector.multi_reduction <add>, %128, %cst_75 [1] : vector<32x128xf32> to vector<32xf32>
      %130 = vector.shape_cast %129 : vector<32xf32> to vector<32x1xf32>
      %cst_76 = arith.constant 1.280000e+02 : f32
      %131 = vector.broadcast %cst_76 : f32 to vector<32x1xf32>
      %132 = arith.divf %130, %131 : vector<32x1xf32>
      %cst_77 = arith.constant 9.99999974E-6 : f32
      %133 = vector.broadcast %cst_77 : f32 to vector<32x1xf32>
      %134 = arith.addf %132, %133 : vector<32x1xf32>
      %135 = math.rsqrt %134 : vector<32x1xf32>
      %136 = vector.broadcast %135 : vector<32x1xf32> to vector<32x128xf32>
      %137 = arith.mulf %127, %136 : vector<32x128xf32>
      %138 = vector.broadcast %120 : vector<1x128xf32> to vector<32x128xf32>
      %139 = arith.mulf %137, %138 : vector<32x128xf32>
      %140 = vector.broadcast %121 : vector<1x128xf32> to vector<32x128xf32>
      %141 = arith.addf %139, %140 : vector<32x128xf32>
      %cst_78 = arith.constant 0.000000e+00 : f32
      %142 = vector.broadcast %cst_78 : f32 to vector<32x128xf32>
      %143 = arith.maximumf %141, %142 : vector<32x128xf32>
      %c0_79 = arith.constant 0 : index
      %c0_80 = arith.constant 0 : index
      %144 = vector.load %arg10[%c0_79, %c0_80] : memref<2x32xbf16, #tpu.memory_space<vmem>>, vector<2x32xbf16>
      %145 = arith.truncf %143 : vector<32x128xf32> to vector<32x128xbf16>
      %cst_81 = arith.constant dense<0.000000e+00> : vector<2x128xf32>
      %146 = tpu.matmul %144, %145, %cst_81 {dimension_numbers = #tpu.dot_dimension_numbers<[1], [0], [0], [1], [0, 0, 1, 1], [], []>} : vector<2x32xbf16>, vector<32x128xbf16>, vector<2x128xf32> -> vector<2x128xf32>
      %c0_82 = arith.constant 0 : index
      %c0_83 = arith.constant 0 : index
      %147 = vector.load %arg11[%c0_82, %c0_83] : memref<2x1xf32, #tpu.memory_space<vmem>>, vector<2x1xf32>
      %148 = vector.broadcast %147 : vector<2x1xf32> to vector<2x128xf32>
      %149 = arith.mulf %146, %148 : vector<2x128xf32>
      %c0_84 = arith.constant 0 : index
      %c0_85 = arith.constant 0 : index
      %150 = vector.load %arg23[%c0_84, %c0_85] : memref<2x128xf32, #tpu.memory_space<vmem>>, vector<2x128xf32>
      tpu.vector_store %arg23[%c0_84, %c0_85], %149 {strides = array<i32>} : memref<2x128xf32, #tpu.memory_space<vmem>>, vector<2x128xf32>,
    } else {
    }
    return
  }
  func.func @transform_0(%arg0: i32) -> (i32, i32) {
    %c0_i32 = arith.constant 0 : i32
    %c0_i32_0 = arith.constant 0 : i32
    %c0_i32_1 = arith.constant 0 : i32
    return %c0_i32, %c0_i32_0 : i32, i32
  }
  func.func @transform_1(%arg0: i32) -> (i32, i32) {
    %c0_i32 = arith.constant 0 : i32
    %c0_i32_0 = arith.constant 0 : i32
    %c0_i32_1 = arith.constant 0 : i32
    return %c0_i32, %c0_i32_0 : i32, i32
  }
  func.func @transform_2(%arg0: i32) -> (i32, i32) {
    %c0_i32 = arith.constant 0 : i32
    %c0_i32_0 = arith.constant 0 : i32
    %c0_i32_1 = arith.constant 0 : i32
    return %c0_i32, %c0_i32_0 : i32, i32
  }
  func.func @transform_3(%arg0: i32) -> (i32, i32) {
    %c0_i32 = arith.constant 0 : i32
    %c0_i32_0 = arith.constant 0 : i32
    %c0_i32_1 = arith.constant 0 : i32
    return %c0_i32, %c0_i32_0 : i32, i32
  }
  func.func @transform_4(%arg0: i32) -> (i32, i32) {
    %c0_i32 = arith.constant 0 : i32
    %c0_i32_0 = arith.constant 0 : i32
    %c0_i32_1 = arith.constant 0 : i32
    return %c0_i32, %c0_i32_0 : i32, i32
  }
  func.func @transform_5(%arg0: i32) -> (i32, i32) {
    %c0_i32 = arith.constant 0 : i32
    %c0_i32_0 = arith.constant 0 : i32
    %c0_i32_1 = arith.constant 0 : i32
    return %c0_i32, %c0_i32_0 : i32, i32
  }
  func.func @transform_6(%arg0: i32) -> (i32, i32) {
    %c0_i32 = arith.constant 0 : i32
    %c0_i32_0 = arith.constant 0 : i32
    %c0_i32_1 = arith.constant 0 : i32
    return %c0_i32, %c0_i32_0 : i32, i32
  }
  func.func @transform_7(%arg0: i32) -> (i32, i32) {
    %c0_i32 = arith.constant 0 : i32
    %c0_i32_0 = arith.constant 0 : i32
    %c0_i32_1 = arith.constant 0 : i32
    return %c0_i32, %c0_i32_0 : i32, i32
  }
  func.func @transform_8(%arg0: i32) -> (i32, i32) {
    %c0_i32 = arith.constant 0 : i32
    %c0_i32_0 = arith.constant 0 : i32
    %c0_i32_1 = arith.constant 0 : i32
    return %c0_i32, %c0_i32_0 : i32, i32
  }
  func.func @transform_9(%arg0: i32) -> (i32, i32) {
    %c0_i32 = arith.constant 0 : i32
    %c0_i32_0 = arith.constant 0 : i32
    %c0_i32_1 = arith.constant 0 : i32
    return %c0_i32, %c0_i32_0 : i32, i32
  }
  func.func @transform_10(%arg0: i32) -> (i32, i32) {
    %c0_i32 = arith.constant 0 : i32
    %c0_i32_0 = arith.constant 0 : i32
    %c0_i32_1 = arith.constant 0 : i32
    return %c0_i32, %c0_i32_0 : i32, i32
  }
  func.func @transform_11(%arg0: i32) -> (i32, i32) {
    %c0_i32 = arith.constant 0 : i32
    %c0_i32_0 = arith.constant 0 : i32
    %c0_i32_1 = arith.constant 0 : i32
    return %c0_i32, %c0_i32_0 : i32, i32
  }
  func.func @transform_12(%arg0: i32) -> (i32, i32) {
    %c0_i32 = arith.constant 0 : i32
    %c0_i32_0 = arith.constant 0 : i32
    %c0_i32_1 = arith.constant 0 : i32
    return %c0_i32, %c0_i32_0 : i32, i32
  }
  func.func @transform_13(%arg0: i32) -> (i32, i32, i32) {
    %c0_i32 = arith.constant 0 : i32
    %c0_i32_0 = arith.constant 0 : i32
    %c0_i32_1 = arith.constant 0 : i32
    return %arg0, %c0_i32, %c0_i32_0 : i32, i32, i32
  }
  func.func @transform_14(%arg0: i32) -> (i32, i32, i32) {
    %c0_i32 = arith.constant 0 : i32
    %c0_i32_0 = arith.constant 0 : i32
    %c0_i32_1 = arith.constant 0 : i32
    return %arg0, %c0_i32, %c0_i32_0 : i32, i32, i32
  }
  func.func @transform_15(%arg0: i32) -> (i32, i32, i32) {
    %c0_i32 = arith.constant 0 : i32
    %c0_i32_0 = arith.constant 0 : i32
    %c0_i32_1 = arith.constant 0 : i32
    return %arg0, %c0_i32, %c0_i32_0 : i32, i32, i32
  }
  func.func @transform_16(%arg0: i32) -> (i32, i32, i32) {
    %c0_i32 = arith.constant 0 : i32
    %c0_i32_0 = arith.constant 0 : i32
    %c0_i32_1 = arith.constant 0 : i32
    return %arg0, %c0_i32, %c0_i32_0 : i32, i32, i32
  }
  func.func @transform_17(%arg0: i32) -> (i32, i32, i32) {
    %c0_i32 = arith.constant 0 : i32
    %c0_i32_0 = arith.constant 0 : i32
    %c0_i32_1 = arith.constant 0 : i32
    return %arg0, %c0_i32, %c0_i32_0 : i32, i32, i32
  }
  func.func @transform_18(%arg0: i32) -> (i32, i32, i32) {
    %c0_i32 = arith.constant 0 : i32
    %c0_i32_0 = arith.constant 0 : i32
    %c0_i32_1 = arith.constant 0 : i32
    return %arg0, %c0_i32, %c0_i32_0 : i32, i32, i32
  }
  func.func @transform_19(%arg0: i32) -> (i32, i32, i32) {
    %c0_i32 = arith.constant 0 : i32
    %c0_i32_0 = arith.constant 0 : i32
    %c0_i32_1 = arith.constant 0 : i32
    return %arg0, %c0_i32, %c0_i32_0 : i32, i32, i32
  }
  func.func @transform_20(%arg0: i32) -> (i32, i32, i32) {
    %c0_i32 = arith.constant 0 : i32
    %c0_i32_0 = arith.constant 0 : i32
    %c0_i32_1 = arith.constant 0 : i32
    return %arg0, %c0_i32, %c0_i32_0 : i32, i32, i32
  }
  func.func @transform_21(%arg0: i32) -> (i32, i32) {
    %c0_i32 = arith.constant 0 : i32
    %c0_i32_0 = arith.constant 0 : i32
    %c0_i32_1 = arith.constant 0 : i32
    return %c0_i32, %c0_i32_0 : i32, i32
  }
  func.func @transform_22(%arg0: i32) -> (i32, i32) {
    %c0_i32 = arith.constant 0 : i32
    %c0_i32_0 = arith.constant 0 : i32
    %c0_i32_1 = arith.constant 0 : i32
    return %c0_i32, %c0_i32_0 : i32, i32
  }
}

</mosaic_0001>

<bundles_post_ra>
// kernel: virtual_node_gnn_forward.1
= control target key start
LH: loop header
LB: loop body
LE: loop exit
PB: predicated region body
PF: predicated region fallthrough
CT: control target
= control target key end

     0   :  { %s3533_s0 = inlined_call_operand.vmem [shape: f32[32,9], index: 0, kind: input, shape index: {}]   ;;  %s3534_s1 = inlined_call_operand.vmem [shape: f32[9,128], index: 1, kind: input, shape index: {}]   ;;  %s3535_s2 = inlined_call_operand.vmem [shape: f32[1,128], index: 2, kind: input, shape index: {}]   ;;  %s3536_s3 = inlined_call_operand.vmem [shape: f32[64,3], index: 3, kind: input, shape index: {}]   ;;  %s3537_s4 = inlined_call_operand.vmem [shape: f32[3,128], index: 4, kind: input, shape index: {}]   ;;  %s3538_s5 = inlined_call_operand.vmem [shape: f32[1,128], index: 5, kind: input, shape index: {}]   ;;  %s3539_s6 = inlined_call_operand.vmem [shape: f32[1,128], index: 6, kind: input, shape index: {}]   ;;  %s3540_s7 = inlined_call_operand.vmem [shape: bf16[64,32], index: 7, kind: input, shape index: {}]   ;;  %s3541_s8 = inlined_call_operand.vmem [shape: bf16[64,32], index: 8, kind: input, shape index: {}]   ;;  %s3542_s9 = inlined_call_operand.vmem [shape: bf16[2,32], index: 9, kind: input, shape index: {}]   ;;  %s3543_s10 = inlined_call_operand.vmem [shape: f32[2,1], index: 10, kind: input, shape index: {}]   ;;  %s3544_s11 = inlined_call_operand.vmem [shape: f32[1,128], index: 11, kind: input, shape index: {}]   ;;  %s3545_s12 = inlined_call_operand.vmem [shape: f32[1,128], index: 12, kind: input, shape index: {}]   ;;  %s3546_s13 = inlined_call_operand.vmem [shape: f32[2,1,128], index: 13, kind: input, shape index: {}]   ;;  %s3547_s14 = inlined_call_operand.vmem [shape: f32[2,1,128], index: 14, kind: input, shape index: {}]   ;;  %s3548_s15 = inlined_call_operand.vmem [shape: bf16[2,128,256], index: 15, kind: input, shape index: {}]   ;;  %s3549_s16 = inlined_call_operand.vmem [shape: f32[2,1,256], index: 16, kind: input, shape index: {}]   ;;  %s3550_s17 = inlined_call_operand.vmem [shape: f32[2,1,256], index: 17, kind: input, shape index: {}]   ;;  %s3551_s18 = inlined_call_operand.vmem [shape: f32[2,1,256], index: 18, kind: input, shape index: {}]   ;;  %s3552_s19 = inlined_call_operand.vmem [shape: bf16[2,256,128], index: 19, kind: input, shape index: {}]   ;;  %s3553_s20 = inlined_call_operand.vmem [shape: f32[2,1,128], index: 20, kind: input, shape index: {}]   ;;  %s3554_s21 = inlined_call_operand.vmem [shape: f32[2,1], index: 21, kind: input, shape index: {}]   ;;  %s3555_s22 = inlined_call_operand.hbm [shape: f32[2,128], index: 22, kind: output, shape index: {}]  }
   0x1   :  { %3566 = sst [smem:[#allocation12_spill]] %s3533_s0 }
   0x2   :  { %3567 = sst [smem:[#allocation13_spill]] %s3534_s1 }
   0x3   :  { %3568 = sst [smem:[#allocation14_spill]] %s3535_s2 }
   0x4   :  { %3569 = sst [smem:[#allocation15_spill]] %s3536_s3 }
   0x5   :  { %3570 = sst [smem:[#allocation16_spill]] %s3537_s4 }
   0x6   :  { %3571 = sst [smem:[#allocation17_spill]] %s3538_s5 }
   0x7   :  { %3572 = sst [smem:[#allocation18_spill]] %s3539_s6 }
   0x8   :  { %3573 = sst [smem:[#allocation19_spill]] %s3544_s11 }
   0x9   :  { %3574 = sst [smem:[#allocation20_spill]] %s3545_s12 }
   0xa   :  { %3575 = sst [smem:[#allocation21_spill]] %s3548_s15 }
   0xb   :  { %3576 = sst [smem:[#allocation22_spill]] %s3554_s21 }
   0xc   :  { %3577 = sst [smem:[#allocation23_spill]] %s3555_s22 }
   0xd   :  { %27 = vsyncpa [#allocation7], 0 }
   0xe   :  { %28 = vsyncpa [#allocation6], 0  ;;  %s2851_s3 = smov 0  }
   0xf LB: > { %3578 = sst [smem:[#allocation11_spill]] %s2728_s3  ;;  %s2857_s28 = sadd.s32 4294967295, %s2728_s3   ;;  %s2728_s3 = sphi %s2851_s3, %s34_s3  }
  0x10   : > { %p2311_p0 = scmp.ge.s32.totalorder %s2728_s3, 1  ;;  %p562_p1 = scmp.lt.s32.totalorder %s2728_s3, 3 }
  0x11   : > { %p2312_p2 = scmp.ne.s32.totalorder %s2857_s28, 0  ;;  %s3579_s21 = sld [smem:[#allocation22_spill]] }
  0x12   : > { %p563_p3 = pnand %p2311_p0, %p562_p1  ;;  %p2578_p4 = scmp.eq.s32.totalorder %s2857_s28, 0 }
  0x13   : > { %s2730_s0 = smov [#allocation5]  }
  0x14   : > { %p2574_p5 = pneg %p563_p3  ;;  %681 = sbr.rel (%p563_p3) target bundleno = 2558 (0x9fe), region = 108 }
  0x16   : > { %p2575_p6 = pnand %p2578_p4, %p2574_p5 }
  0x17   : > { %s613_s4 = sshll.u32 %s3579_s21, 4  ;;  %s614_s4 = int_to_ptr.vmem [resolvable:$true] %s613_s4 }
  0x18   : > { %2577 = dma.vmem_to_smem (!%p2575_p6), %s614_s4, 32, %s2730_s0, [#allocation7]  }
  0x19   : > { %2719 = dma.done.wait (%p2578_p4), [#allocation7], 32  }
  0x1a   : > { %2721 = vsyncadd (%p2578_p4), [#allocation7], 4294967264 }
  0x1b   : > { %688 = sfence }
  0x1c   : > { %p766_p7 = scmp.lt.s32.totalorder %s2857_s28, 1  ;;  %s3580_s15 = sld [smem:[#allocation21_spill]] }
  0x1d   : > { %s3581_s21 = sld [smem:[#allocation13_spill]] (!%p2312_p2) }
  0x1e   : > { %s2868_s23 = scalar_select %p766_p7, %s2857_s28, 1 }
  0x1f   : > { %801 = sbr.rel (%p2312_p2) target bundleno = 193 (0xc1), region = 116  ;;  %s3582_s22 = sld [smem:[#allocation16_spill]] (!%p2312_p2) }
  0x20   : > { %s2520_s2 = sshll.u32 %s2868_s23, 7  ;;  %s2880_s27 = sshll.u32 %s2868_s23, 1 }
  0x21   : > { %s780_s5 = scalar_lea.vmem %s3549_s16, %s2880_s27  ;;  %s2902_s29 = scalar_lea.vmem %s3552_s19, %s2520_s2 }
  0x22   : > { %s2885_s4 = scalar_lea.vmem %s3580_s15, %s2520_s2  ;;  %s3583_s30 = sld [smem:[#allocation12_spill]] (!%p2312_p2) }
  0x23   : > { %s3584_s0 = sld [smem:[#allocation15_spill]] (!%p2312_p2) }
  0x24   : > { %v807_v0 = vld [vmem:[%s3581_s21 + $0x8] sm:$0x1]  ;;  %vm825_vm0 = vcmask 1040384   ;;  %v806_v1 = vld [vmem:[%s3581_s21] sm:$0xff]  ;;  %vm900_vm1 = vcmask 1042432   ;;  %vm812_vm2 = vcmask 72704  }
  0x25   : > { %v870_v2 = vld [vmem:[%s3582_s22] sm:$0x7]  ;;  %2562 = vmatpush.msk.msra.mxu3 %vm825_vm0, %v807_v0  ;;  %vm875_vm3 = vcmask 23552   ;;  %2324 = vmatpush.msk.msra.mxu0 %vm825_vm0, %v807_v0  ;;  %s3585_s26 = sld [smem:[#allocation18_spill]] }
  0x26   : > { %2564 = vmatpush.msk.msra.mxu2 %vm900_vm1, %v870_v2  ;;  %2329 = vmatpush.msk.msra.mxu1 %vm900_vm1, %v870_v2  ;;  %s3586_s3 = sld [smem:[#allocation14_spill]] }
  0x27   : > { %2563 = vmatpush.msra.mxu3 %v806_v1  ;;  %844 = vmatpush.msra.mxu0 %v806_v1  ;;  %s3587_s6 = sld [smem:[#allocation17_spill]] }
  0x28   : > { %v805_v3 = vld [vmem:[%s3583_s30 + $0x18] sm:$0xff]  ;;  %v802_v5 = vld [vmem:[%s3583_s30] sm:$0xff]  ;;  %v803_v9 = vld [vmem:[%s3583_s30 + $0x8] sm:$0xff] }
  0x29   : > { %v865_v4 = vld [vmem:[%s3584_s0 + $0x18] sm:$0xff]  ;;  %v862_v6 = vld [vmem:[%s3584_s0] sm:$0xff]  ;;  %2328 = vmatmul.msk.f32.vlgmr.msra.gmra.mxu3 %vm812_vm2, %v805_v3  ;;  %2325 = vmatmul.msk.f32.vlgmr.msra.gmra.mxu0 %vm812_vm2, %v802_v5  ;;  %v868_v8 = vld [vmem:[%s3584_s0 + $0x30] sm:$0xff] }
  0x2a   : > { %2333 = vmatmul.msk.f32.vlgmr.msra.gmra.mxu2 %vm875_vm3, %v865_v4  ;;  %2565 = vmatpush.msk.msrb.mxu3 %vm900_vm1, %v870_v2  ;;  %v866_v7 = vld [vmem:[%s3584_s0 + $0x20] sm:$0xff]  ;;  %v863_v10 = vld [vmem:[%s3584_s0 + $0x8] sm:$0xff]  ;;  %v869_v12 = vld [vmem:[%s3584_s0 + $0x38] sm:$0xff] }
  0x2b   : > { %2330 = vmatmul.msk.f32.vlgmr.msra.gmra.mxu1 %vm875_vm3, %v862_v6  ;;  %v867_v11 = vld [vmem:[%s3584_s0 + $0x28] sm:$0xff]  ;;  %v804_v13 = vld [vmem:[%s3583_s30 + $0x10] sm:$0xff]  ;;  %v2598_v15 = vld [vmem:[%s3585_s26] ss:$0 sm:$0xff] }
  0x2c   : > { %v864_v14 = vld [vmem:[%s3584_s0 + $0x10] sm:$0xff]  ;;  %957 = vst [vmem:[#allocation4] sm:$0x3] %v2598_v15  ;;  %v2596_v16 = vld [vmem:[%s3586_s3] ss:$0 sm:$0xff] }
  0x2d   : > { %v2597_v17 = vld [vmem:[%s3587_s6] ss:$0 sm:$0xff] }
  0x31   : > { %2336 = vmatmul.msk.f32.vlgmr.msrb.gmra.mxu3 %vm875_vm3, %v868_v8  ;;  %2326 = vmatmul.msk.f32.gmra.mxu0 %vm812_vm2, %v803_v9 }
  0x32   : > { %2334 = vmatmul.msk.f32.gmra.mxu2 %vm875_vm3, %v866_v7 }
  0x33   : > { %2331 = vmatmul.msk.f32.gmra.mxu1 %vm875_vm3, %v863_v10 }
  0x39   : > { %2337 = vmatmul.msk.f32.gmra.mxu3 %vm875_vm3, %v869_v12  ;;  %2327 = vmatmul.msk.f32.gmra.mxu0 %vm812_vm2, %v804_v13 }
  0x3a   : > { %2335 = vmatmul.msk.f32.gmra.mxu2 %vm875_vm3, %v867_v11 }
  0x3b   : > { %2332 = vmatmul.msk.f32.gmra.mxu1 %vm875_vm3, %v864_v14 }
  0xa6   : > { %v846_v18 = vpop.f32.mrf.mxu0 }
  0xa7   : > { %v847_v19 = vadd.f32 %v2596_v16, %v846_v18 }
  0xa8   : > { %v921_v20 = vpop.f32.mrf.mxu1 }
  0xa9   : > { %v922_v21 = vadd.f32 %v2597_v17, %v921_v20  ;;  %858 = vst [vmem:[#allocation2 + $0x10] sm:$0xff] %v847_v19 }
  0xab   : > { %945 = vst [vmem:[#allocation3] sm:$0xff] %v922_v21 }
  0xac   : > { %v855_v23 = vpop.f32.mrf.mxu3 }
  0xad   : > { %v930_v22 = vpop.f32.mrf.mxu2  ;;  %v856_v25 = vadd.f32 %v2596_v16, %v855_v23 }
  0xae   : > { %v931_v24 = vadd.f32 %v2597_v17, %v930_v22  ;;  %v849_v26 = vpop.f32.mrf.mxu0 }
  0xaf   : > { %861 = vst [vmem:[#allocation2 + $0x8] sm:$0xff] %v856_v25  ;;  %v850_v27 = vadd.f32 %v2596_v16, %v849_v26 }
  0xb0   : > { %948 = vst [vmem:[#allocation3 + $0x18] sm:$0xff] %v931_v24  ;;  %v924_v28 = vpop.f32.mrf.mxu1 }
  0xb1   : > { %v925_v29 = vadd.f32 %v2597_v17, %v924_v28  ;;  %859 = vst [vmem:[#allocation2] sm:$0xff] %v850_v27 }
  0xb3   : > { %946 = vst [vmem:[#allocation3 + $0x38] sm:$0xff] %v925_v29 }
  0xb4   : > { %v939_v32 = vpop.f32.mrf.mxu3 }
  0xb5   : > { %v933_v30 = vpop.f32.mrf.mxu2  ;;  %v940_v33 = vadd.f32 %v2597_v17, %v939_v32 }
  0xb6   : > { %v934_v31 = vadd.f32 %v2597_v17, %v933_v30  ;;  %v852_v34 = vpop.f32.mrf.mxu0 }
  0xb7   : > { %951 = vst [vmem:[#allocation3 + $0x30] sm:$0xff] %v940_v33  ;;  %v853_v35 = vadd.f32 %v2596_v16, %v852_v34 }
  0xb8   : > { %949 = vst [vmem:[#allocation3 + $0x20] sm:$0xff] %v934_v31  ;;  %v927_v36 = vpop.f32.mrf.mxu1 }
  0xb9   : > { %v928_v37 = vadd.f32 %v2597_v17, %v927_v36  ;;  %860 = vst [vmem:[#allocation2 + $0x18] sm:$0xff] %v853_v35 }
  0xbb   : > { %947 = vst [vmem:[#allocation3 + $0x8] sm:$0xff] %v928_v37 }
  0xbc   : > { %v942_v40 = vpop.f32.mrf.mxu3 }
  0xbd   : > { %v936_v38 = vpop.f32.mrf.mxu2  ;;  %v943_v41 = vadd.f32 %v2597_v17, %v942_v40 }
  0xbe   : > { %v937_v39 = vadd.f32 %v2597_v17, %v936_v38 }
  0xbf   : > { %952 = vst [vmem:[#allocation3 + $0x28] sm:$0xff] %v943_v41 }
  0xc0   : > { %950 = vst [vmem:[#allocation3 + $0x10] sm:$0xff] %v937_v39 }
  0xc1 PF: > { %v960_v42 = vld [vmem:[#allocation2 + $0x18] sm:$0xff]  ;;  %v958_v43 = vld [vmem:[#allocation2 + $0x10] sm:$0xff]  ;;  %v961_v44 = vld [vmem:[#allocation2 + $0x8] sm:$0xff]  ;;  %v2731_v46 = vmov 128.0   ;;  %s3590_s2 = scalar_lea.vmem %s3546_s13, %s2868_s23  ;;  %s3591_s26 = scalar_lea.vmem %s3547_s14, %s2868_s23  ;;  %vm3564_vm1 = vcmask 261120   ;;  %vm3565_vm2 = vcmask 523264  }
  0xc2   : > { %968 = vadd.xlane.f32.xlu0 %v960_v42  ;;  %964 = vadd.xlane.f32.xlu1 %v958_v43  ;;  %v959_v45 = vld [vmem:[#allocation2] sm:$0xff]  ;;  %2603 = vrcp.f32 %v2731_v46  ;;  %s2358_s6 = sshll.u32 %s2857_s28, 7  ;;  %s3611_s1 = scalar_lea.vmem %s3550_s17, %s2880_s27 }
  0xc3   : > { %v2600_v40 = vld [vmem:[%s3590_s2] ss:$0 sm:$0xff]  ;;  %s1174_s15 = sld [smem:[#allocation5 + %s2358_s6]]  ;;  %s3612_s25 = scalar_lea.vmem %s3551_s18, %s2880_s27 }
  0xc4   : > { %p2514_p8 = scmp.ne.s32.totalorder %s2857_s28, 1 }
  0xc6   : > { %v1094_v37 = vld [vmem:[#allocation3 + $0x28] sm:$0xff] }
  0xc8   : > { %v2604_v47 = vpop.eup %2603 }
  0xc9   : > { %v973_v48 = vmul.f32 128.0, %v2604_v47  ;;  %vm977_vm4 = vweird.f32 %v2604_v47 }
  0xca   : > { %970 = vadd.xlane.f32.xlu0 %v961_v44  ;;  %966 = vadd.xlane.f32.xlu1 %v959_v45 }
  0xcb   : > { %v974_v49 = vsub.f32 1.0, %v973_v48 }
  0xcd   : > { %v975_v50 = vmul.f32 %v2604_v47, %v974_v49 }
  0xcf   : > { %v976_v51 = vadd.f32 %v2604_v47, %v975_v50 }
  0xd1   : > { %v2976_v52 = vsel %vm977_vm4, %v2604_v47, %v976_v51  ;;  %v2601_v47 = vld [vmem:[%s3591_s26] ss:$0 sm:$0xff]  ;;  %s3618_s26 = sld [smem:[#allocation20_spill]] (!%p2514_p8) }
 0x135   : > { %v969_v53 = vpop.xlane.xlu0 %968  ;;  %v965_v54 = vpop.xlane.xlu1 %964 }
 0x136   : > { %v981_v55 = vmul.f32 %v2976_v52, %v969_v53  ;;  %v979_v56 = vmul.f32 %v2976_v52, %v965_v54 }
 0x138   : > { %v2980_v57 = vsub.f32 %v958_v43, %v979_v56  ;;  %v985_v58 = vsub.f32 %v960_v42, %v981_v55 }
 0x13a   : > { %v989_v59 = vmul.f32 %v985_v58, %v985_v58  ;;  %v987_v60 = vmul.f32 %v2980_v57, %v2980_v57 }
 0x13c   : > { %995 = vadd.xlane.f32.xlu2 %v989_v59  ;;  %991 = vadd.xlane.f32.xlu0 %v987_v60 }
 0x13d   : > { %v971_v61 = vpop.xlane.xlu0 %970  ;;  %v967_v62 = vpop.xlane.xlu1 %966 }
 0x13e   : > { %v982_v63 = vmul.f32 %v2976_v52, %v971_v61  ;;  %v980_v0 = vmul.f32 %v2976_v52, %v967_v62 }
 0x140   : > { %v2986_v1 = vsub.f32 %v961_v44, %v982_v63  ;;  %v2988_v2 = vsub.f32 %v959_v45, %v980_v0 }
 0x142   : > { %v990_v3 = vmul.f32 %v2986_v1, %v2986_v1  ;;  %v988_v4 = vmul.f32 %v2988_v2, %v2988_v2 }
 0x144   : > { %997 = vadd.xlane.f32.xlu2 %v990_v3  ;;  %993 = vadd.xlane.f32.xlu1 %v988_v4  ;;  %v2522_v3 = vld [vmem:[%s3540_s7] sm:$0xff]  ;;  %v2523_v4 = vld [vmem:[%s3540_s7 + $0x8] sm:$0xff] }
 0x1af   : > { %v996_v5 = vpop.xlane.xlu2 %995  ;;  %v992_v6 = vpop.xlane.xlu0 %991 }
 0x1b0   : > { %v1001_v7 = vmul.f32 %v996_v5, %v2976_v52  ;;  %v999_v8 = vmul.f32 %v992_v6, %v2976_v52  ;;  %v3048_v5 = vld [vmem:[%s3541_s8] sm:$0xff]  ;;  %v2524_v6 = vld [vmem:[%s3540_s7 + $0x10] sm:$0xff] }
 0x1b1   : > { %1249 = vxpose.xlu2.c.b16.start [1/4] (short) (narrow) %v3048_v5, 32 }
 0x1b2   : > { %v1005_v9 = vadd.f32 1e-05, %v1001_v7  ;;  %v1003_v10 = vadd.f32 1e-05, %v999_v8  ;;  %v3057_v7 = vld [vmem:[%s3541_s8 + $0x8] sm:$0xff]  ;;  %v2525_v8 = vld [vmem:[%s3540_s7 + $0x18] sm:$0xff] }
 0x1b4   : > { %2605 = vrsqrt.f32 %v1005_v9  ;;  %vm1033_vm6 = vweird.f32 %v1005_v9  ;;  %vm1013_vm9 = vweird.f32 %v1003_v10 }
 0x1b5   : > { %2607 = vrsqrt.f32 %v1003_v10 }
 0x1b7   : > { %v998_v11 = vpop.xlane.xlu2 %997  ;;  %v994_v12 = vpop.xlane.xlu1 %993 }
 0x1b8   : > { %v1002_v13 = vmul.f32 %v998_v11, %v2976_v52  ;;  %v1000_v14 = vmul.f32 %v994_v12, %v2976_v52 }
 0x1ba   : > { %v2606_v15 = vpop.eup %2605  ;;  %v1006_v16 = vadd.f32 1e-05, %v1002_v13  ;;  %v1004_v17 = vadd.f32 1e-05, %v1000_v14 }
 0x1bb   : > { %v2608_v18 = vpop.eup %2607  ;;  %v1028_v19 = vmul.f32 %v2606_v15, %v1005_v9  ;;  %vm1034_vm5 = vweird.f32 %v2606_v15  ;;  %v3067_v9 = vld [vmem:[%s3541_s8 + $0x10] sm:$0xff] }
 0x1bc   : > { %v1008_v20 = vmul.f32 %v2608_v18, %v1003_v10  ;;  %2609 = vrsqrt.f32 %v1006_v16  ;;  %vm1035_vm7 = vmor %vm1033_vm6, %vm1034_vm5  ;;  %vm1014_vm8 = vweird.f32 %v2608_v18  ;;  %vm1043_vm13 = vweird.f32 %v1006_v16  ;;  %v3074_v10 = vld [vmem:[%s3541_s8 + $0x18] sm:$0xff] }
 0x1bd   : > { %v1029_v21 = vmul.f32 %v2606_v15, %v1028_v19  ;;  %2611 = vrsqrt.f32 %v1004_v17  ;;  %vm2998_vm10 = vmor %vm1013_vm9, %vm1014_vm8  ;;  %vm1023_vm15 = vweird.f32 %v1004_v17  ;;  %v1091_v19 = vld [vmem:[#allocation3 + $0x20] sm:$0xff] }
 0x1be   : > { %v1009_v22 = vmul.f32 %v2608_v18, %v1008_v20  ;;  %v1093_v20 = vld [vmem:[#allocation3 + $0x30] sm:$0xff] }
 0x1bf   : > { %v1030_v23 = vmul.f32 0.5, %v1029_v21  ;;  %v1087_v21 = vld [vmem:[#allocation3] sm:$0xff] }
 0x1c0   : > { %v1010_v24 = vmul.f32 0.5, %v1009_v22 }
 0x1c1   : > { %v1031_v25 = vsub.f32 1.5, %v1030_v23  ;;  %1250 = vxpose.xlu2.c.b16.cont [2/4] (short) (narrow) %v3057_v7, 32  ;;  %v1089_v23 = vld [vmem:[#allocation3 + $0x8] sm:$0xff] }
 0x1c2   : > { %v2610_v26 = vpop.eup %2609  ;;  %v1011_v27 = vsub.f32 1.5, %v1010_v24  ;;  %v1090_v24 = vld [vmem:[#allocation3 + $0x18] sm:$0xff] }
 0x1c3   : > { %v2612_v28 = vpop.eup %2611  ;;  %v1032_v29 = vmul.f32 %v2606_v15, %v1031_v25  ;;  %v1038_v30 = vmul.f32 %v2610_v26, %v1006_v16  ;;  %vm1044_vm11 = vweird.f32 %v2610_v26 }
 0x1c4   : > { %v1018_v31 = vmul.f32 %v2612_v28, %v1004_v17  ;;  %v1012_v32 = vmul.f32 %v2608_v18, %v1011_v27  ;;  %vm1024_vm12 = vweird.f32 %v2612_v28  ;;  %vm1045_vm14 = vmor %vm1043_vm13, %vm1044_vm11  ;;  %v1092_v17 = vld [vmem:[#allocation3 + $0x10] sm:$0xff] }
 0x1c5   : > { %v1039_v33 = vmul.f32 %v2610_v26, %v1038_v30  ;;  %v1036_v34 = vsel %vm1035_vm7, %v2606_v15, %v1032_v29  ;;  %vm1025_vm0 = vmor %vm1023_vm15, %vm1024_vm12 }
 0x1c6   : > { %v1019_v35 = vmul.f32 %v2612_v28, %v1018_v31  ;;  %v1049_v39 = vmul.f32 %v1036_v34, %v985_v58  ;;  %v1016_v41 = vsel %vm2998_vm10, %v2608_v18, %v1012_v32  ;;  %v1088_v18 = vld [vmem:[#allocation3 + $0x38] sm:$0xff] }
 0x1c7   : > { %v1040_v36 = vmul.f32 0.5, %v1039_v33  ;;  %v1047_v48 = vmul.f32 %v1016_v41, %v2980_v57 }
 0x1c8   : > { %v1020_v38 = vmul.f32 0.5, %v1019_v35  ;;  %v1056_v46 = vmul.f32 %v2600_v40, %v1049_v39 }
 0x1c9   : > { %v1041_v42 = vsub.f32 1.5, %v1040_v36  ;;  %v1054_v56 = vmul.f32 %v2600_v40, %v1047_v48 }
 0x1ca   : > { %v1021_v43 = vsub.f32 1.5, %v1020_v38  ;;  %v3017_v55 = vadd.f32 %v2601_v47, %v1056_v46 }
 0x1cb   : > { %v1042_v44 = vmul.f32 %v2610_v26, %v1041_v42  ;;  %v3025_v62 = vadd.f32 %v2601_v47, %v1054_v56 }
 0x1cc   : > { %v1022_v45 = vmul.f32 %v2612_v28, %v1021_v43  ;;  %v3561_v61 = vmax.f32 %v3017_v55, 0.0 }
 0x1cd   : > { %v1046_v49 = vsel %vm1045_vm14, %v2610_v26, %v1042_v44 }
 0x1ce   : > { %v1026_v50 = vsel %vm1025_vm0, %v2612_v28, %v1022_v45  ;;  %v1050_v51 = vmul.f32 %v1046_v49, %v2986_v1  ;;  %v3563_v1 = vmax.f32 %v3025_v62, 0.0 }
 0x1cf   : > { %v1048_v53 = vmul.f32 %v1026_v50, %v2988_v2 }
 0x1d0   : > { %v1057_v54 = vmul.f32 %v2600_v40, %v1050_v51 }
 0x1d1   : > { %v1055_v58 = vmul.f32 %v2600_v40, %v1048_v53  ;;  %1251 = vxpose.xlu2.c.b16.cont [3/4] (short) (narrow) %v3067_v9, 32 }
 0x1d2   : > { %v3019_v59 = vadd.f32 %v2601_v47, %v1057_v54 }
 0x1d3   : > { %v3021_v60 = vadd.f32 %v2601_v47, %v1055_v58  ;;  %v1175_v47 = vstv %s1174_s15  ;;  %s3613_s15 = scalar_lea.vmem %s3553_s20, %s2868_s23 }
 0x1d4   : > { %v3560_v57 = vmax.f32 %v3019_v59, 0.0 }
 0x1d5   : > { %v3562_v0 = vmax.f32 %v3021_v60, 0.0 }
 0x1d6   : > { %v1086_v63 = vpack.c.bf16 %v3560_v57, %v3561_v61 }
 0x1d7   : > { %v1085_v2 = vpack.c.bf16 %v3562_v0, %v3563_v1 }
 0x1d8   : > { %1134 = vmatpush.bf16.msra.mxu0 %v1086_v63 }
 0x1dc   : > { %1135 = vmatpush.bf16.msra.mxu0 %v1085_v2 }
 0x1df   : > { %2354 = vmatmul.msk.bf16.vlgmr.msra.gmra.mxu0 %vm3564_vm1, %v2522_v3 }
 0x1e1   : > { %1252 = vxpose.xlu2.c.b16.end [4/4] (short) (narrow) %v3074_v10, 32 }
 0x1ef   : > { %2355 = vmatmul.msk.bf16.gmra.mxu0 %vm3564_vm1, %v2523_v4 }
 0x1ff   : > { %2356 = vmatmul.msk.bf16.gmra.mxu0 %vm3564_vm1, %v2524_v6 }
 0x20f   : > { %2357 = vmatmul.msk.bf16.gmra.mxu0 %vm3564_vm1, %v2525_v8 }
 0x25c   : > { %v1137_v11 = vpop.f32.mrf.mxu0 }
 0x25d   : > { %v1138_v29 = vadd.f32 %v1137_v11, %v1087_v21 }
 0x25f   : > { %v1157_v36 = vmax.f32 %v1138_v29, 0.0 }
 0x261   : > { %v3086_v46 = vadd.f32 1e-07, %v1157_v36 }
 0x263   : > { %v1176_v63 = vmul.f32 %v1175_v47, %v3086_v46 }
 0x264   : > { %v1139_v12 = vpop.f32.mrf.mxu0 }
 0x265   : > { %v1140_v26 = vadd.f32 %v1139_v12, %v1088_v18 }
 0x267   : > { %v1158_v33 = vmax.f32 %v1140_v26, 0.0 }
 0x269   : > { %v3080_v42 = vadd.f32 1e-07, %v1158_v33 }
 0x26b   : > { %v1177_v53 = vmul.f32 %v1175_v47, %v3080_v42 }
 0x26c   : > { %v1142_v13 = vpop.f32.mrf.mxu0 }
 0x26d   : > { %v1143_v30 = vadd.f32 %v1142_v13, %v1089_v23 }
 0x26f   : > { %v1159_v38 = vmax.f32 %v1143_v30, 0.0 }
 0x271   : > { %v3088_v48 = vadd.f32 1e-07, %v1159_v38 }
 0x273   : > { %v1178_v2 = vmul.f32 %v1175_v47, %v3088_v48 }
 0x274   : > { %v1144_v14 = vpop.f32.mrf.mxu0 }
 0x275   : > { %v1145_v31 = vadd.f32 %v1144_v14, %v1090_v24 }
 0x277   : > { %v1160_v39 = vmax.f32 %v1145_v31, 0.0 }
 0x279   : > { %v3090_v49 = vadd.f32 1e-07, %v1160_v39 }
 0x27b   : > { %v1179_v3 = vmul.f32 %v1175_v47, %v3090_v49 }
 0x27c   : > { %v1147_v15 = vpop.f32.mrf.mxu0 }
 0x27d   : > { %v1148_v27 = vadd.f32 %v1147_v15, %v1091_v19 }
 0x27f   : > { %v1161_v34 = vmax.f32 %v1148_v27, 0.0 }
 0x281   : > { %v3082_v43 = vadd.f32 1e-07, %v1161_v34 }
 0x283   : > { %v1180_v54 = vmul.f32 %v1175_v47, %v3082_v43 }
 0x284   : > { %v1149_v16 = vpop.f32.mrf.mxu0 }
 0x285   : > { %v1150_v22 = vadd.f32 %v1149_v16, %v1092_v17  ;;  %v1184_v8 = vmax.f32 %v1176_v63, %v1180_v54 }
 0x287   : > { %v1162_v32 = vmax.f32 %v1150_v22, 0.0 }
 0x289   : > { %v3078_v40 = vadd.f32 1e-07, %v1162_v32 }
 0x28b   : > { %v1181_v50 = vmul.f32 %v1175_v47, %v3078_v40 }
 0x28c   : > { %v1152_v25 = vpop.f32.mrf.mxu0 }
 0x28d   : > { %v1153_v28 = vadd.f32 %v1152_v25, %v1093_v20  ;;  %v1185_v4 = vmax.f32 %v1177_v53, %v1181_v50 }
 0x28f   : > { %v1163_v35 = vmax.f32 %v1153_v28, 0.0  ;;  %v1188_v13 = vmax.f32 %v1184_v8, %v1185_v4 }
 0x291   : > { %v3084_v44 = vadd.f32 1e-07, %v1163_v35 }
 0x293   : > { %v1182_v56 = vmul.f32 %v1175_v47, %v3084_v44 }
 0x294   : > { %v1154_v41 = vpop.f32.mrf.mxu0 }
 0x295   : > { %v1155_v45 = vadd.f32 %v1154_v41, %v1094_v37  ;;  %v1186_v11 = vmax.f32 %v1178_v2, %v1182_v56 }
 0x297   : > { %v1164_v51 = vmax.f32 %v1155_v45, 0.0 }
 0x299   : > { %v3096_v58 = vadd.f32 1e-07, %v1164_v51 }
 0x29b   : > { %v1183_v6 = vmul.f32 %v1175_v47, %v3096_v58 }
 0x29d   : > { %v1187_v12 = vmax.f32 %v1179_v3, %v1183_v6 }
 0x29f   : > { %v1189_v14 = vmax.f32 %v1186_v11, %v1187_v12 }
 0x2a1   : > { %v1190_v15 = vmax.f32 %v1188_v13, %v1189_v14 }
 0x2a3   : > { %v1191_v16 = vrot.slane %v1190_v15, 4 }
 0x2a5   : > { %v1192_v17 = vmax.f32 %v1190_v15, %v1191_v16 }
 0x2a7   : > { %v1193_v18 = vrot.slane %v1192_v17, 2 }
 0x2a9   : > { %v1194_v19 = vmax.f32 %v1192_v17, %v1193_v18 }
 0x2ab   : > { %v1195_v20 = vrot.slane %v1194_v19, 1 }
 0x2ad   : > { %v1196_v21 = vmax.f32 %v1194_v19, %v1195_v20 }
 0x2af   : > { %v1204_v22 = vsub.f32 %v1183_v6, %v1196_v21  ;;  %v1203_v23 = vsub.f32 %v1182_v56, %v1196_v21  ;;  %v1201_v24 = vsub.f32 %v1180_v54, %v1196_v21  ;;  %v1202_v25 = vsub.f32 %v1181_v50, %v1196_v21 }
 0x2b0   : > { %v1199_v29 = vsub.f32 %v1178_v2, %v1196_v21  ;;  %v1200_v31 = vsub.f32 %v1179_v3, %v1196_v21  ;;  %v1197_v33 = vsub.f32 %v1176_v63, %v1196_v21  ;;  %v1198_v35 = vsub.f32 %v1177_v53, %v1196_v21  ;;  %v3126_v3 = vpop.trf.xlu2 }
 0x2b1   : > { %v1219_v26 = vmul.f32 1.442695, %v1204_v22  ;;  %v1217_v27 = vmul.f32 1.442695, %v1203_v23  ;;  %v1213_v28 = vmul.f32 1.442695, %v1201_v24 }
 0x2b2   : > { %v1215_v30 = vmul.f32 1.442695, %v1202_v25  ;;  %v1209_v32 = vmul.f32 1.442695, %v1199_v29  ;;  %v1211_v34 = vmul.f32 1.442695, %v1200_v31 }
 0x2b3   : > { %2613 = vpow2.f32 %v1219_v26  ;;  %v1205_v37 = vmul.f32 1.442695, %v1197_v33  ;;  %v1207_v39 = vmul.f32 1.442695, %v1198_v35 }
 0x2b4   : > { %2615 = vpow2.f32 %v1217_v27 }
 0x2b5   : > { %2617 = vpow2.f32 %v1213_v28 }
 0x2b6   : > { %2619 = vpow2.f32 %v1215_v30 }
 0x2b7   : > { %2621 = vpow2.f32 %v1209_v32 }
 0x2b8   : > { %2623 = vpow2.f32 %v1211_v34  ;;  %v3130_v4 = vpop.trf.xlu2 }
 0x2b9   : > { %v3102_v36 = vpop.eup %2613  ;;  %2625 = vpow2.f32 %v1205_v37 }
 0x2ba   : > { %v3104_v38 = vpop.eup %2615  ;;  %2627 = vpow2.f32 %v1207_v39 }
 0x2bb   : > { %v3106_v41 = vpop.eup %2617  ;;  %v1224_v45 = vpack.c.bf16 %v3102_v36, %v3104_v38 }
 0x2bc   : > { %v3110_v47 = vpop.eup %2619 }
 0x2bd   : > { %1276 = vmatpush.bf16.msra.mxu1 %v1224_v45  ;;  %v3112_v50 = vpop.eup %2621  ;;  %v1223_v51 = vpack.c.bf16 %v3110_v47, %v3106_v41 }
 0x2be   : > { %v3116_v53 = vpop.eup %2623 }
 0x2bf   : > { %v3118_v54 = vpop.eup %2625  ;;  %v1222_v56 = vpack.c.bf16 %v3116_v53, %v3112_v50 }
 0x2c0   : > { %v3122_v63 = vpop.eup %2627 }
 0x2c1   : > { %1277 = vmatpush.bf16.msra.mxu1 %v1223_v51  ;;  %v1221_v2 = vpack.c.bf16 %v3122_v63, %v3118_v54 }
 0x2c5   : > { %1278 = vmatpush.bf16.msra.mxu1 %v1222_v56 }
 0x2c9   : > { %1279 = vmatpush.bf16.msra.mxu1 %v1221_v2 }
 0x2cc   : > { %2375 = vmatmul.msk.bf16.vlgmr.msra.gmra.mxu1 %vm3565_vm2, %v3126_v3 }
 0x2dc   : > { %2376 = vmatmul.msk.bf16.gmra.mxu1 %vm3565_vm2, %v3130_v4 }
 0x349   : > { %v1281_v6 = vpop.f32.mrf.mxu1 }
 0x351   : > { %v1283_v8 = vpop.f32.mrf.mxu1 }
 0x352   : > { %v1291_v14 = vpack.c.bf16 %v1283_v8, %v1281_v6 }
 0x359   : > { %v1286_v11 = vpop.f32.mrf.mxu1 }
 0x361   : > { %v1288_v12 = vpop.f32.mrf.mxu1 }
 0x362   : > { %v1292_v13 = vpack.c.bf16 %v1288_v12, %v1286_v11 }
 0x364   : > { %1311 = vmatpush.bf16.msra.mxu2 %v1292_v13 }
 0x368   : > { %1312 = vmatpush.bf16.msra.mxu2 %v1291_v14 }
 0x36b   : > { %2377 = vmatmul.msk.bf16.vlgmr.msra.gmra.mxu2 %vm3564_vm1, %v3048_v5 }
 0x37b   : > { %2378 = vmatmul.msk.bf16.gmra.mxu2 %vm3564_vm1, %v3057_v7 }
 0x38b   : > { %2379 = vmatmul.msk.bf16.gmra.mxu2 %vm3564_vm1, %v3067_v9 }
 0x39b   : > { %2380 = vmatmul.msk.bf16.gmra.mxu2 %vm3564_vm1, %v3074_v10 }
 0x3ee   : > { %v1314_v15 = vpop.f32.mrf.mxu2 }
 0x3ef   : > { %v3144_v21 = vmax.f32 %v1314_v15, 1e-20 }
 0x3f1   : > { %vm1347_vm1 = vweird.f32 %v3144_v21 }
 0x3f6   : > { %v1316_v16 = vpop.f32.mrf.mxu2 }
 0x3f7   : > { %v3142_v20 = vmax.f32 %v1316_v16, 1e-20 }
 0x3f9   : > { %2629 = vrcp.f32 %v3142_v20  ;;  %v1366_v16 = vand.u32 2147483647, %v3142_v20  ;;  %vm1362_vm0 = vweird.f32 %v3142_v20 }
 0x3fa   : > { %2631 = vrcp.f32 %v3144_v21 }
 0x3fe   : > { %v1319_v17 = vpop.f32.mrf.mxu2 }
 0x3ff   : > { %v3149_v7 = vmax.f32 %v1319_v17, 1e-20  ;;  %v3158_v23 = vpop.eup %2629 }
 0x400   : > { %v3164_v26 = vpop.eup %2631  ;;  %v1358_v27 = vmul.f32 %v3158_v23, %v3142_v20  ;;  %vm1363_vm11 = vweird.f32 %v3158_v23 }
 0x401   : > { %v1343_v31 = vmul.f32 %v3164_v26, %v3144_v21  ;;  %vm1377_vm10 = vweird.f32 %v3149_v7  ;;  %vm1348_vm15 = vweird.f32 %v3164_v26 }
 0x402   : > { %v1359_v33 = vsub.f32 1.0, %v1358_v27 }
 0x403   : > { %v1344_v51 = vsub.f32 1.0, %v1343_v31  ;;  %v1383_v31 = vand.u32 2147483648, %v3149_v7 }
 0x404   : > { %v1360_v11 = vmul.f32 %v3158_v23, %v1359_v33 }
 0x406   : > { %v1321_v18 = vpop.f32.mrf.mxu2  ;;  %v3206_v33 = vadd.f32 %v3158_v23, %v1360_v11 }
 0x407   : > { %v3154_v10 = vmax.f32 %v1321_v18, 1e-20  ;;  %v1381_v18 = vand.u32 2147483647, %v3149_v7 }
 0x409   : > { %vm1392_vm3 = vweird.f32 %v3154_v10 }
 0x40e   : > { %v1324_v19 = vpop.f32.mrf.mxu2 }
 0x40f   : > { %v3151_v9 = vmax.f32 %v1324_v19, 1e-20  ;;  %v3199_v19 = vmul.f32 %v3164_v26, %v1344_v51 }
 0x411   : > { %vm1407_vm6 = vweird.f32 %v3151_v9 }
 0x416   : > { %v1326_v22 = vpop.f32.mrf.mxu2 }
 0x417   : > { %v3147_v5 = vmax.f32 %v1326_v22, 1e-20  ;;  %v1368_v22 = vand.u32 2147483648, %v3142_v20 }
 0x419   : > { %2633 = vrcp.f32 %v3147_v5  ;;  %vm1422_vm14 = vweird.f32 %v3147_v5  ;;  %v1426_v61 = vand.u32 2147483647, %v3147_v5 }
 0x41a   : > { %2635 = vrcp.f32 %v3149_v7 }
 0x41b   : > { %2637 = vrcp.f32 %v3151_v9 }
 0x41c   : > { %2639 = vrcp.f32 %v3154_v10 }
 0x41e   : > { %v1329_v24 = vpop.f32.mrf.mxu2 }
 0x41f   : > { %v3162_v25 = vmax.f32 %v1329_v24, 1e-20  ;;  %v3168_v28 = vpop.eup %2633 }
 0x420   : > { %v3171_v29 = vpop.eup %2635  ;;  %v1418_v34 = vmul.f32 %v3168_v28, %v3147_v5  ;;  %vm1423_vm9 = vweird.f32 %v3168_v28 }
 0x421   : > { %2641 = vrcp.f32 %v3162_v25  ;;  %v3173_v30 = vpop.eup %2637  ;;  %v1373_v35 = vmul.f32 %v3171_v29, %v3149_v7  ;;  %vm1378_vm7 = vweird.f32 %v3171_v29  ;;  %vm1437_vm8 = vweird.f32 %v3162_v25 }
 0x422   : > { %v3177_v32 = vpop.eup %2639  ;;  %v1403_v37 = vmul.f32 %v3173_v30, %v3151_v9  ;;  %v1419_v6 = vsub.f32 1.0, %v1418_v34  ;;  %vm1408_vm13 = vweird.f32 %v3173_v30 }
 0x423   : > { %v1388_v56 = vmul.f32 %v3177_v32, %v3154_v10  ;;  %v1374_v12 = vsub.f32 1.0, %v1373_v35  ;;  %vm1393_vm4 = vweird.f32 %v3177_v32  ;;  %v1396_v35 = vand.u32 2147483647, %v3154_v10 }
 0x424   : > { %v1404_v13 = vsub.f32 1.0, %v1403_v37  ;;  %v1420_v27 = vmul.f32 %v3168_v28, %v1419_v6  ;;  %v1443_v6 = vand.u32 2147483648, %v3162_v25 }
 0x425   : > { %v1389_v17 = vsub.f32 1.0, %v1388_v56  ;;  %v1375_v34 = vmul.f32 %v3171_v29, %v1374_v12  ;;  %v1441_v56 = vand.u32 2147483647, %v3162_v25 }
 0x426   : > { %v1331_v39 = vpop.f32.mrf.mxu2  ;;  %v1444_v0 = vor.u32 1.1754944e-38, %v1443_v6  ;;  %v2425_v6 = vld [vmem:[%s2885_s4 + $0x50] sm:$0xf] }
 0x427   : > { %v3185_v45 = vpop.eup %2641  ;;  %v3189_v2 = vmax.f32 %v1331_v39, 1e-20  ;;  %v1405_v39 = vmul.f32 %v3173_v30, %v1404_v13  ;;  %v1390_v11 = vmul.f32 %v3177_v32, %v1389_v17  ;;  %v1413_v17 = vand.u32 2147483648, %v3151_v9 }
 0x428   : > { %v1433_v8 = vmul.f32 %v3185_v45, %v3162_v25  ;;  %vm1438_vm5 = vweird.f32 %v3185_v45  ;;  %v1428_v25 = vand.u32 2147483648, %v3147_v5  ;;  %v1376_v13 = vadd.f32 %v3171_v29, %v1375_v34 }
 0x429   : > { %2643 = vrcp.f32 %v3189_v2  ;;  %vm3229_vm12 = vmor %vm1437_vm8, %vm1438_vm5  ;;  %v1406_v57 = vadd.f32 %v3173_v30, %v1405_v39  ;;  %vm1442_vm5 = vcmp.eq.f32.partialorder %v1441_v56, 8.507059e+37  ;;  %v1458_v1 = vand.u32 2147483648, %v3189_v2 }
 0x42a   : > { %v1434_v14 = vsub.f32 1.0, %v1433_v8  ;;  %v1411_v8 = vand.u32 2147483647, %v3151_v9  ;;  %vm3247_vm8 = vmor %vm1422_vm14, %vm1423_vm9  ;;  %v1456_v5 = vand.u32 2147483647, %v3189_v2  ;;  %vm1452_vm14 = vweird.f32 %v3189_v2 }
 0x42b   : > { %vm3261_vm9 = vmor %vm1407_vm6, %vm1408_vm13  ;;  %v1414_v34 = vor.u32 1.1754944e-38, %v1413_v17  ;;  %v2417_v9 = vld [vmem:[%s2885_s4 + $0x40] sm:$0xf] }
 0x42c   : > { %v1435_v24 = vmul.f32 %v3185_v45, %v1434_v14  ;;  %v1421_v14 = vadd.f32 %v3168_v28, %v1420_v27  ;;  %vm3275_vm6 = vmor %vm1392_vm3, %vm1393_vm4  ;;  %vm1457_vm2 = vcmp.eq.f32.partialorder %v1456_v5, 8.507059e+37  ;;  %vm1382_vm4 = vcmp.eq.f32.partialorder %v1381_v18, 8.507059e+37 }
 0x42d   : > { %vm3287_vm3 = vmor %vm1377_vm10, %vm1378_vm7 }
 0x42e   : > { %v1436_v37 = vadd.f32 %v3185_v45, %v1435_v24  ;;  %v1425_v39 = vsel %vm3247_vm8, %v3168_v28, %v1421_v14  ;;  %v1459_v28 = vor.u32 1.1754944e-38, %v1458_v1  ;;  %vm1412_vm8 = vcmp.eq.f32.partialorder %v1411_v8, 8.507059e+37  ;;  %vm1364_vm7 = vmor %vm1362_vm0, %vm1363_vm11 }
 0x42f   : > { %v2644_v51 = vpop.eup %2643  ;;  %v1384_v8 = vor.u32 1.1754944e-38, %v1383_v31  ;;  %v1365_v7 = vsel %vm1364_vm7, %v3158_v23, %v3206_v33  ;;  %vm3318_vm10 = vmor %vm1347_vm1, %vm1348_vm15  ;;  %vm1367_vm11 = vcmp.eq.f32.partialorder %v1366_v16, 8.507059e+37  ;;  %vm3605_vm15 = vcmask 523264  }
 0x430   : > { %v1448_v12 = vmul.f32 %v2644_v51, %v3189_v2  ;;  %v1440_v27 = vsel %vm3229_vm12, %v3185_v45, %v1436_v37  ;;  %v1391_v45 = vadd.f32 %v3177_v32, %v1390_v11  ;;  %vm1453_vm12 = vweird.f32 %v2644_v51  ;;  %vm3606_vm0 = vmmov %vm3605_vm15 }
 0x431   : > { %v1445_v56 = vsel %vm1442_vm5, %v1444_v0, %v1440_v27  ;;  %v1429_v11 = vor.u32 1.1754944e-38, %v1428_v25  ;;  %v1410_v0 = vsel %vm3261_vm9, %v3173_v30, %v1406_v57  ;;  %vm1427_vm5 = vcmp.eq.f32.partialorder %v1426_v61, 8.507059e+37  ;;  %vm1454_vm13 = vmor %vm1452_vm14, %vm1453_vm12  ;;  %v2427_v27 = vld [vmem:[%s2885_s4 + $0x58] sm:$0xf0] }
 0x432   : > { %v1449_v24 = vsub.f32 1.0, %v1448_v12  ;;  %v1446_v2 = vmul.f32 %v3104_v38, %v1445_v56  ;;  %v1395_v61 = vsel %vm3275_vm6, %v3177_v32, %v1391_v45  ;;  %v1415_v30 = vsel %vm1412_vm8, %v1414_v34, %v1410_v0  ;;  %v2441_v12 = vld [vmem:[%s2885_s4 + $0x70] sm:$0xf]  ;;  %v2545_v45 = vld [vmem:[%s2885_s4 + $0x74] sm:$0xf0] }
 0x433   : > { %v1430_v14 = vsel %vm1427_vm5, %v1429_v11, %v1425_v39  ;;  %v1346_v38 = vadd.f32 %v3164_v26, %v3199_v19  ;;  %v1380_v32 = vsel %vm3287_vm3, %v3171_v29, %v1376_v13  ;;  %v1353_v19 = vand.u32 2147483648, %v3144_v21  ;;  %v2443_v0 = vld [vmem:[%s2885_s4 + $0x78] sm:$0xf0] }
 0x434   : > { %v1450_v37 = vmul.f32 %v2644_v51, %v1449_v24  ;;  %v1398_v24 = vand.u32 2147483648, %v3154_v10  ;;  %v1416_v10 = vmul.f32 %v3106_v41, %v1415_v30  ;;  %v1385_v29 = vsel %vm1382_vm4, %v1384_v8, %v1380_v32  ;;  %v2540_v30 = vld [vmem:[%s2885_s4 + $0x54] sm:$0xf]  ;;  %v2411_v8 = vld [vmem:[%s2885_s4 + $0x38] sm:$0xf0] }
 0x435   : > { %v1350_v31 = vsel %vm3318_vm10, %v3164_v26, %v1346_v38  ;;  %v1354_v33 = vor.u32 1.1754944e-38, %v1353_v19  ;;  %v1386_v16 = vmul.f32 %v3112_v50, %v1385_v29  ;;  %v2541_v50 = vld [vmem:[%s2885_s4 + $0x54] sm:$0xf0]  ;;  %v2538_v38 = vld [vmem:[%s2885_s4 + $0x44] sm:$0xf] }
 0x436   : > { %v1451_v15 = vadd.f32 %v2644_v51, %v1450_v37  ;;  %v1399_v1 = vor.u32 1.1754944e-38, %v1398_v24  ;;  %v1466_v20 = vmul.f32 %v1416_v10, %v3082_v43  ;;  %v2543_v37 = vld [vmem:[%s2885_s4 + $0x64] sm:$0xf0]  ;;  %v2536_v32 = vld [vmem:[%s2885_s4 + $0x34] sm:$0xf] }
 0x437   : > { %v2535_v19 = vld [vmem:[%s2885_s4 + $0x24] sm:$0xf0]  ;;  %v2403_v10 = vld [vmem:[%s2885_s4 + $0x28] sm:$0xf0]  ;;  %v2533_v29 = vld [vmem:[%s2885_s4 + $0x14] sm:$0xf0] }
 0x438   : > { %v1455_v25 = vsel %vm1454_vm13, %v2644_v51, %v1451_v15  ;;  %v1431_v51 = vmul.f32 %v3110_v47, %v1430_v14 }
 0x439   : > { %v1460_v57 = vsel %vm1457_vm2, %v1459_v28, %v1455_v25  ;;  %vm1397_vm2 = vcmp.eq.f32.partialorder %v1396_v35, 8.507059e+37  ;;  %v2539_v28 = vld [vmem:[%s2885_s4 + $0x44] sm:$0xf0]  ;;  %v2409_v25 = vld [vmem:[%s2885_s4 + $0x30] sm:$0xf] }
 0x43a   : > { %v1461_v15 = vmul.f32 %v3102_v36, %v1460_v57  ;;  %v1400_v17 = vsel %vm1397_vm2, %v1399_v1, %v1395_v61  ;;  %v1468_v36 = vmul.f32 %v1446_v2, %v3084_v44  ;;  %v1369_v44 = vor.u32 1.1754944e-38, %v1368_v22  ;;  %v2542_v2 = vld [vmem:[%s2885_s4 + $0x64] sm:$0xf]  ;;  %v2537_v61 = vld [vmem:[%s2885_s4 + $0x34] sm:$0xf0] }
 0x43b   : > { %v1467_v41 = vmul.f32 %v1431_v51, %v3078_v40  ;;  %v1401_v23 = vmul.f32 %v3116_v53, %v1400_v17  ;;  %v3604_v22 = vand.u32 2147483647, %v3144_v21  ;;  %v2442_v40 = vor.u32 %v2545_v45, %v2441_v12  ;;  %v2433_v53 = vld [vmem:[%s2885_s4 + $0x60] sm:$0xf]  ;;  %v2387_v12 = vld [vmem:[%s2885_s4 + $0x8] sm:$0xf0] }
 0x43c   : > { %v1469_v47 = vmul.f32 %v1461_v15, %v3096_v58  ;;  %v1370_v35 = vsel %vm1367_vm11, %v1369_v44, %v1365_v7  ;;  %v2434_v43 = vor.u32 %v2543_v37, %v2433_v53  ;;  %v1464_v21 = vmul.f32 %v1386_v16, %v3088_v48  ;;  %v2419_v15 = vld [vmem:[%s2885_s4 + $0x48] sm:$0xf0]  ;;  %v2393_v7 = vld [vmem:[%s2885_s4 + $0x10] sm:$0xf]  ;;  %v2532_v44 = vld [vmem:[%s2885_s4 + $0x14] sm:$0xf] }
 0x43d   : > { %vm1352_vm1 = vcmp.eq.f32.partialorder %v3604_v22, 8.507059e+37  ;;  %v1472_v5 = vpack.c.bf16 %v1467_v41, %v1466_v20  ;;  %v1465_v39 = vmul.f32 %v1401_v23, %v3090_v49  ;;  %v1371_v56 = vmul.f32 %v3122_v63, %v1370_v35  ;;  %1597 = vmatpush.bf16.msrb.mxu1 %v2442_v40  ;;  %v2544_v49 = vld [vmem:[%s2885_s4 + $0x74] sm:$0xf] }
 0x43e   : > { %v1473_v58 = vpack.c.bf16 %v1469_v47, %v1468_v36  ;;  %v1355_v26 = vsel %vm1352_vm1, %v1354_v33, %v1350_v31  ;;  %v2426_v63 = vor.u32 %v2541_v50, %v2425_v6  ;;  %v2446_v14 = vor.u32 %v2544_v49, %v2443_v0  ;;  %v2534_v36 = vld [vmem:[%s2885_s4 + $0x24] sm:$0xf]  ;;  %v2531_v31 = vld [vmem:[%s2885_s4 + $0x4] sm:$0xf0] }
 0x43f   : > { %v1356_v11 = vmul.f32 %v3118_v54, %v1355_v26  ;;  %v1471_v13 = vpack.c.bf16 %v1465_v39, %v1464_v21  ;;  %v1463_v24 = vmul.f32 %v1371_v56, %v3080_v42  ;;  %v2435_v54 = vld [vmem:[%s2885_s4 + $0x68] sm:$0xf0]  ;;  %v2418_v42 = vor.u32 %v2539_v28, %v2417_v9  ;;  %v2530_v33 = vld [vmem:[%s2885_s4 + $0x4] sm:$0xf] }
 0x440   : > { %1478 = vmatpush.bf16.msra.mxu3 %v1473_v58  ;;  %v2438_v57 = vor.u32 %v2542_v2, %v2435_v54  ;;  %v2430_v1 = vor.u32 %v2540_v30, %v2427_v27  ;;  %v2422_v51 = vor.u32 %v2538_v38, %v2419_v15  ;;  %v2414_v17 = vor.u32 %v2536_v32, %v2411_v8  ;;  %v2395_v58 = vld [vmem:[%s2885_s4 + $0x18] sm:$0xf0] }
 0x441   : > { %1598 = vmatpush.bf16.msrb.mxu1 %v2434_v43  ;;  %v1462_v34 = vmul.f32 %v1356_v11, %v3086_v46  ;;  %v2410_v46 = vor.u32 %v2537_v61, %v2409_v25  ;;  %v2406_v18 = vor.u32 %v2534_v36, %v2403_v10  ;;  %v2394_v41 = vor.u32 %v2533_v29, %v2393_v7 }
 0x442   : > { %v2398_v23 = vor.u32 %v2532_v44, %v2395_v58  ;;  %v2390_v45 = vor.u32 %v2530_v33, %v2387_v12  ;;  %v3607_v22 = vmax.f32 %v3025_v62, 0.0  ;;  %v3608_v53 = vmax.f32 %v3021_v60, 0.0  ;;  %v1511_v60 = vld [vmem:[%s780_s5] sm:$0x3] }
 0x443   : > { %v1470_v48 = vpack.c.bf16 %v1463_v24, %v1462_v34  ;;  %v3609_v56 = vmax.f32 %v3017_v55, 0.0  ;;  %v3610_v6 = vmax.f32 %v3019_v59, 0.0  ;;  %v1513_v11 = vperm.slane %v1511_v60, 0 }
 0x444   : > { %1479 = vmatpush.bf16.msra.mxu3 %v1472_v5  ;;  %vm3614_vm1 = vcmask 261120  }
 0x445   : > { %1599 = vmatpush.bf16.msrb.mxu1 %v2426_v63 }
 0x448   : > { %1480 = vmatpush.bf16.msra.mxu3 %v1471_v13  ;;  %v1514_v13 = vperm.slane %v1511_v60, 1  ;;  %v2559_v60 = vld [vmem:[%s2902_s29 + $0x68] sm:$0xff] }
 0x449   : > { %1600 = vmatpush.bf16.msrb.mxu1 %v2418_v42 }
 0x44c   : > { %1481 = vmatpush.bf16.msra.mxu3 %v1470_v48 }
 0x44d   : > { %1601 = vmatpush.bf16.msrb.mxu1 %v2410_v46  ;;  %v2732_v46 = vmov 256.0  }
 0x44e   : > { %2645 = vrcp.f32 %v2732_v46 }
 0x44f   : > { %2381 = vmatmul.msk.bf16.vlgmr.msra.gmra.mxu3 %vm3605_vm15, %v3126_v3  ;;  %v2401_v3 = vld [vmem:[%s2885_s4 + $0x20] sm:$0xf]  ;;  %vm2008_vm15 = vcmask 1040384  }
 0x450   : > { %1616 = vmatpush.bf16.msrb.mxu3 %v2446_v14  ;;  %v2402_v47 = vor.u32 %v2535_v19, %v2401_v3 }
 0x452   : > { %1602 = vmatpush.bf16.msrb.mxu1 %v2402_v47 }
 0x454   : > { %1617 = vmatpush.bf16.msrb.mxu3 %v2438_v57 }
 0x456   : > { %1603 = vmatpush.bf16.msrb.mxu1 %v2394_v41 }
 0x458   : > { %1618 = vmatpush.bf16.msrb.mxu3 %v2430_v1  ;;  %v2646_v1 = vpop.eup %2645 }
 0x459   : > { %v1650_v38 = vmul.f32 256.0, %v2646_v1  ;;  %vm1654_vm12 = vweird.f32 %v2646_v1 }
 0x45b   : > { %v1651_v15 = vsub.f32 1.0, %v1650_v38 }
 0x45c   : > { %1619 = vmatpush.bf16.msrb.mxu3 %v2422_v51 }
 0x45d   : > { %v1652_v51 = vmul.f32 %v2646_v1, %v1651_v15 }
 0x45f   : > { %2382 = vmatmul.msk.bf16.gmra.mxu3 %vm3606_vm0, %v3130_v4  ;;  %v2385_v4 = vld [vmem:[%s2885_s4] sm:$0xf]  ;;  %v1653_v32 = vadd.f32 %v2646_v1, %v1652_v51  ;;  %vm2001_vm0 = vcmask 15360  }
 0x460   : > { %1620 = vmatpush.bf16.msrb.mxu3 %v2414_v17  ;;  %v2386_v35 = vor.u32 %v2531_v31, %v2385_v4 }
 0x461   : > { %v3390_v8 = vsel %vm1654_vm12, %v2646_v1, %v1653_v32  ;;  %v1635_v32 = vld [vmem:[%s3611_s1] sm:$0x3] }
 0x462   : > { %1604 = vmatpush.bf16.msrb.mxu1 %v2386_v35 }
 0x464   : > { %1621 = vmatpush.bf16.msrb.mxu3 %v2406_v18 }
 0x468   : > { %1622 = vmatpush.bf16.msrb.mxu3 %v2398_v23 }
 0x46c   : > { %1623 = vmatpush.bf16.msrb.mxu3 %v2390_v45 }
 0x4d2   : > { %v1483_v20 = vpop.f32.mrf.mxu3 }
 0x4d3   : > { %v1484_v40 = vadd.f32 %v1483_v20, %v3607_v22 }
 0x4da   : > { %v1485_v16 = vpop.f32.mrf.mxu3 }
 0x4db   : > { %v1486_v37 = vadd.f32 %v1485_v16, %v3608_v53 }
 0x4dd   : > { %v1493_v26 = vpack.c.bf16 %v1486_v37, %v1484_v40 }
 0x4df   : > { %1605 = vmatmul.bf16.vlgmr.msrb.gmra.mxu1 %v1493_v26  ;;  %1624 = vmatmul.bf16.vlgmr.msrb.gmra.mxu3 %v1493_v26 }
 0x4e2   : > { %v1488_v5 = vpop.f32.mrf.mxu3 }
 0x4e3   : > { %v1489_v43 = vadd.f32 %v1488_v5, %v3609_v56  ;;  %v2561_v56 = vld [vmem:[%s2902_s29 + $0x78] sm:$0xff] }
 0x4e4   : > { %1933 = vmatpush.bf16.msrb.mxu2 %v2561_v56 }
 0x4ea   : > { %v1490_v39 = vpop.f32.mrf.mxu3 }
 0x4eb   : > { %v1491_v50 = vadd.f32 %v1490_v39, %v3610_v6  ;;  %v2552_v6 = vld [vmem:[%s2902_s29 + $0x30] sm:$0xff] }
 0x4ed   : > { %v1494_v21 = vpack.c.bf16 %v1491_v50, %v1489_v43  ;;  %v2553_v43 = vld [vmem:[%s2902_s29 + $0x38] sm:$0xff]  ;;  %v2560_v50 = vld [vmem:[%s2902_s29 + $0x70] sm:$0xff] }
 0x4ee   : > { %1914 = vmatpush.bf16.msrb.mxu0 %v2553_v43  ;;  %1934 = vmatpush.bf16.msrb.mxu2 %v2560_v50 }
 0x4ef   : > { %1610 = vmatmul.bf16.gmra.mxu1 %v1494_v21  ;;  %1629 = vmatmul.bf16.gmra.mxu3 %v1494_v21  ;;  %v2551_v21 = vld [vmem:[%s2902_s29 + $0x28] sm:$0xff] }
 0x4f2   : > { %1915 = vmatpush.bf16.msrb.mxu0 %v2552_v6  ;;  %1935 = vmatpush.bf16.msrb.mxu2 %v2559_v60 }
 0x4f6   : > { %1916 = vmatpush.bf16.msrb.mxu0 %v2551_v21 }
 0x55c   : > { %v1606_v62 = vpop.f32.mrf.mxu1 }
 0x55d   : > { %v1607_v49 = vadd.f32 %v1606_v62, %v1513_v11  ;;  %v2550_v62 = vld [vmem:[%s2902_s29 + $0x20] sm:$0xff] }
 0x55e   : > { %1917 = vmatpush.bf16.msrb.mxu0 %v2550_v62 }
 0x562   : > { %v1625_v24 = vpop.f32.mrf.mxu3 }
 0x563   : > { %v1626_v0 = vadd.f32 %v1625_v24, %v1514_v13  ;;  %v2557_v24 = vld [vmem:[%s2902_s29 + $0x58] sm:$0xff] }
 0x564   : > { %v1608_v63 = vpop.f32.mrf.mxu1 }
 0x565   : > { %v1637_v55 = vadd.f32 %v1626_v0, %v1607_v49  ;;  %v1609_v59 = vadd.f32 %v1608_v63, %v1513_v11  ;;  %v2548_v63 = vld [vmem:[%s2902_s29 + $0x10] sm:$0xff] }
 0x567   : > { %1638 = vadd.xlane.f32.xlu0 %v1637_v55  ;;  %v2556_v55 = vld [vmem:[%s2902_s29 + $0x50] sm:$0xff] }
 0x56a   : > { %v1627_v9 = vpop.f32.mrf.mxu3 }
 0x56b   : > { %v1628_v28 = vadd.f32 %v1627_v9, %v1514_v13 }
 0x56c   : > { %v1611_v14 = vpop.f32.mrf.mxu1 }
 0x56d   : > { %v1640_v34 = vadd.f32 %v1628_v28, %v1609_v59  ;;  %v1612_v2 = vadd.f32 %v1611_v14, %v1513_v11 }
 0x56f   : > { %1641 = vadd.xlane.f32.xlu1 %v1640_v34 }
 0x572   : > { %v1630_v48 = vpop.f32.mrf.mxu3 }
 0x573   : > { %v1631_v54 = vadd.f32 %v1630_v48, %v1514_v13  ;;  %v2546_v48 = vld [vmem:[%s2902_s29] sm:$0xff] }
 0x574   : > { %v1613_v25 = vpop.f32.mrf.mxu1 }
 0x575   : > { %v1643_v42 = vadd.f32 %v1631_v54, %v1612_v2  ;;  %v1614_v57 = vadd.f32 %v1613_v25, %v1513_v11  ;;  %v2558_v11 = vld [vmem:[%s2902_s29 + $0x60] sm:$0xff] }
 0x576   : > { %1936 = vmatpush.bf16.msrb.mxu2 %v2558_v11 }
 0x577   : > { %1644 = vadd.xlane.f32.xlu0 %v1643_v42 }
 0x57a   : > { %v1632_v61 = vpop.f32.mrf.mxu3  ;;  %1937 = vmatpush.bf16.msrb.mxu2 %v2557_v24 }
 0x57b   : > { %v1633_v30 = vadd.f32 %v1632_v61, %v1514_v13  ;;  %v2549_v13 = vld [vmem:[%s2902_s29 + $0x18] sm:$0xff] }
 0x57c   : > { %1918 = vmatpush.bf16.msrb.mxu0 %v2549_v13 }
 0x57d   : > { %v1646_v27 = vadd.f32 %v1633_v30, %v1614_v57 }
 0x57e   : > { %1938 = vmatpush.bf16.msrb.mxu2 %v2556_v55 }
 0x57f   : > { %1647 = vadd.xlane.f32.xlu1 %v1646_v27 }
 0x580   : > { %1919 = vmatpush.bf16.msrb.mxu0 %v2548_v63 }
 0x5da   : > { %v1639_v17 = vpop.xlane.xlu0 %1638 }
 0x5db   : > { %v1656_v3 = vmul.f32 %v3390_v8, %v1639_v17 }
 0x5dd   : > { %v3393_v19 = vsub.f32 %v1607_v49, %v1656_v3  ;;  %v3395_v36 = vsub.f32 %v1626_v0, %v1656_v3 }
 0x5df   : > { %v1668_v47 = vmul.f32 %v3393_v19, %v3393_v19  ;;  %v1669_v10 = vmul.f32 %v3395_v36, %v3395_v36 }
 0x5e1   : > { %v1676_v7 = vadd.f32 %v1669_v10, %v1668_v47 }
 0x5e2   : > { %v1642_v29 = vpop.xlane.xlu1 %1641 }
 0x5e3   : > { %v1657_v18 = vmul.f32 %v3390_v8, %v1642_v29  ;;  %1677 = vadd.xlane.f32.xlu0 %v1676_v7  ;;  %v1745_v7 = vperm.slane %v1635_v32, 0 }
 0x5e5   : > { %v3402_v44 = vsub.f32 %v1609_v59, %v1657_v18  ;;  %v3404_v58 = vsub.f32 %v1628_v28, %v1657_v18  ;;  %v2547_v59 = vld [vmem:[%s2902_s29 + $0x8] sm:$0xff] }
 0x5e6   : > { %v2555_v28 = vld [vmem:[%s2902_s29 + $0x48] sm:$0xff]  ;;  %1920 = vmatpush.bf16.msrb.mxu0 %v2547_v59 }
 0x5e7   : > { %v1670_v41 = vmul.f32 %v3402_v44, %v3402_v44  ;;  %v1671_v23 = vmul.f32 %v3404_v58, %v3404_v58  ;;  %1939 = vmatpush.bf16.msrb.mxu2 %v2555_v28 }
 0x5e9   : > { %v1679_v4 = vadd.f32 %v1671_v23, %v1670_v41  ;;  %v1636_v23 = vld [vmem:[%s3612_s25] sm:$0x3] }
 0x5ea   : > { %v1645_v31 = vpop.xlane.xlu0 %1644  ;;  %1921 = vmatpush.bf16.msrb.mxu0 %v2546_v48 }
 0x5eb   : > { %v1658_v33 = vmul.f32 %v3390_v8, %v1645_v31  ;;  %1680 = vadd.xlane.f32.xlu1 %v1679_v4  ;;  %v1746_v4 = vperm.slane %v1635_v32, 1 }
 0x5ed   : > { %v3411_v35 = vsub.f32 %v1612_v2, %v1658_v33  ;;  %v3413_v12 = vsub.f32 %v1631_v54, %v1658_v33  ;;  %v2554_v2 = vld [vmem:[%s2902_s29 + $0x40] sm:$0xff]  ;;  %s3617_s29 = sld [smem:[#allocation19_spill]] (!%p2514_p8) }
 0x5ee   : > { %1940 = vmatpush.bf16.msrb.mxu2 %v2554_v2 }
 0x5ef   : > { %v1672_v45 = vmul.f32 %v3411_v35, %v3411_v35  ;;  %v1673_v20 = vmul.f32 %v3413_v12, %v3413_v12 }
 0x5f1   : > { %v1682_v16 = vadd.f32 %v1673_v20, %v1672_v45 }
 0x5f2   : > { %v1648_v22 = vpop.xlane.xlu1 %1647 }
 0x5f3   : > { %v1659_v40 = vmul.f32 %v3390_v8, %v1648_v22  ;;  %1683 = vadd.xlane.f32.xlu0 %v1682_v16  ;;  %v1758_v22 = vperm.slane %v1636_v23, 0 }
 0x5f5   : > { %v3420_v53 = vsub.f32 %v1614_v57, %v1659_v40  ;;  %v3422_v37 = vsub.f32 %v1633_v30, %v1659_v40  ;;  %v1759_v40 = vperm.slane %v1636_v23, 1 }
 0x5f7   : > { %v1674_v26 = vmul.f32 %v3420_v53, %v3420_v53  ;;  %v1675_v5 = vmul.f32 %v3422_v37, %v3422_v37 }
 0x5f9   : > { %v1685_v39 = vadd.f32 %v1675_v5, %v1674_v26 }
 0x5fb   : > { %1686 = vadd.xlane.f32.xlu1 %v1685_v39 }
 0x656   : > { %v1678_v49 = vpop.xlane.xlu0 %1677 }
 0x657   : > { %v1688_v0 = vmul.f32 %v1678_v49, %v3390_v8 }
 0x659   : > { %v1692_v9 = vadd.f32 1e-05, %v1688_v0 }
 0x65b   : > { %2647 = vrsqrt.f32 %v1692_v9  ;;  %vm1702_vm14 = vweird.f32 %v1692_v9 }
 0x65e   : > { %v1681_v34 = vpop.xlane.xlu1 %1680 }
 0x65f   : > { %v1689_v14 = vmul.f32 %v1681_v34, %v3390_v8 }
 0x661   : > { %v2648_v54 = vpop.eup %2647  ;;  %v1693_v42 = vadd.f32 1e-05, %v1689_v14 }
 0x662   : > { %v1697_v25 = vmul.f32 %v2648_v54, %v1692_v9  ;;  %vm1703_vm9 = vweird.f32 %v2648_v54 }
 0x663   : > { %2649 = vrsqrt.f32 %v1693_v42  ;;  %vm1704_vm5 = vmor %vm1702_vm14, %vm1703_vm9  ;;  %vm1712_vm13 = vweird.f32 %v1693_v42 }
 0x664   : > { %v1698_v61 = vmul.f32 %v2648_v54, %v1697_v25 }
 0x666   : > { %v1699_v57 = vmul.f32 0.5, %v1698_v61  ;;  %v1684_v30 = vpop.xlane.xlu0 %1683 }
 0x667   : > { %v1690_v27 = vmul.f32 %v1684_v30, %v3390_v8 }
 0x668   : > { %v1700_v46 = vsub.f32 1.5, %v1699_v57 }
 0x669   : > { %v2650_v1 = vpop.eup %2649  ;;  %v1694_v38 = vadd.f32 1e-05, %v1690_v27 }
 0x66a   : > { %v1701_v15 = vmul.f32 %v2648_v54, %v1700_v46  ;;  %v1707_v51 = vmul.f32 %v2650_v1, %v1693_v42  ;;  %vm1713_vm6 = vweird.f32 %v2650_v1 }
 0x66b   : > { %2651 = vrsqrt.f32 %v1694_v38  ;;  %vm1714_vm8 = vmor %vm1712_vm13, %vm1713_vm6  ;;  %vm1722_vm2 = vweird.f32 %v1694_v38 }
 0x66c   : > { %v1705_v17 = vsel %vm1704_vm5, %v2648_v54, %v1701_v15  ;;  %v1708_v3 = vmul.f32 %v2650_v1, %v1707_v51 }
 0x66d   : > { %v1736_v29 = vmul.f32 %v1705_v17, %v3393_v19  ;;  %v1737_v18 = vmul.f32 %v1705_v17, %v3395_v36 }
 0x66e   : > { %v1709_v47 = vmul.f32 0.5, %v1708_v3  ;;  %v1687_v10 = vpop.xlane.xlu1 %1686 }
 0x66f   : > { %v1691_v41 = vmul.f32 %v1687_v10, %v3390_v8  ;;  %v1749_v19 = vmul.f32 %v1745_v7, %v1736_v29  ;;  %v1750_v36 = vmul.f32 %v1746_v4, %v1737_v18  ;;  %v1975_v29 = vld [vmem:[%s3543_s10] sm:$0x3]  ;;  %v2733_v18 = vmov 0  }
 0x670   : > { %v1710_v31 = vsub.f32 1.5, %v1709_v47  ;;  %2599 = vset.pattern.permute.xlu0 %v2733_v18 }
 0x671   : > { %v2652_v33 = vpop.eup %2651  ;;  %v1695_v45 = vadd.f32 1e-05, %v1691_v41  ;;  %v1762_v6 = vadd.f32 %v1758_v22, %v1749_v19  ;;  %v1763_v21 = vadd.f32 %v1759_v40, %v1750_v36  ;;  %1978 = vperm.xlu0 %2599, %v1975_v29  }
 0x672   : > { %v1711_v20 = vmul.f32 %v2650_v1, %v1710_v31  ;;  %v1717_v16 = vmul.f32 %v2652_v33, %v1694_v38  ;;  %vm1723_vm3 = vweird.f32 %v2652_v33  ;;  %v2602_v31 = vld [vmem:[%s3613_s15] ss:$0 sm:$0xff] }
 0x673   : > { %2653 = vrsqrt.f32 %v1695_v45  ;;  %vm1724_vm4 = vmor %vm1722_vm2, %vm1723_vm3  ;;  %v1770_v0 = vmax.f32 %v1762_v6, 0.0  ;;  %v1771_v55 = vmax.f32 %v1763_v21, 0.0  ;;  %vm1732_vm10 = vweird.f32 %v1695_v45  ;;  %v2657_v6 = vld [vmem:[#allocation2] sm:$0xff] }
 0x674   : > { %v1715_v8 = vsel %vm1714_vm8, %v2650_v1, %v1711_v20  ;;  %v1718_v26 = vmul.f32 %v2652_v33, %v1717_v16 }
 0x675   : > { %v1738_v5 = vmul.f32 %v1715_v8, %v3402_v44  ;;  %v1739_v39 = vmul.f32 %v1715_v8, %v3404_v58 }
 0x676   : > { %v1719_v56 = vmul.f32 0.5, %v1718_v26 }
 0x677   : > { %v1751_v43 = vmul.f32 %v1745_v7, %v1738_v5  ;;  %v1752_v50 = vmul.f32 %v1746_v4, %v1739_v39  ;;  %v2655_v5 = vld [vmem:[#allocation2 + $0x18] sm:$0xff] }
 0x678   : > { %v1720_v60 = vsub.f32 1.5, %v1719_v56  ;;  %v2656_v56 = vld [vmem:[#allocation2 + $0x8] sm:$0xff] }
 0x679   : > { %v2654_v62 = vpop.eup %2653  ;;  %v1764_v11 = vadd.f32 %v1758_v22, %v1751_v43  ;;  %v1765_v13 = vadd.f32 %v1759_v40, %v1752_v50 }
 0x67a   : > { %v1721_v24 = vmul.f32 %v2652_v33, %v1720_v60  ;;  %v1727_v49 = vmul.f32 %v2654_v62, %v1695_v45  ;;  %vm1733_vm7 = vweird.f32 %v2654_v62  ;;  %v2658_v60 = vld [vmem:[#allocation2 + $0x10] sm:$0xff] }
 0x67b   : > { %v1772_v63 = vmax.f32 %v1764_v11, 0.0  ;;  %v1773_v44 = vmax.f32 %v1765_v13, 0.0  ;;  %vm1734_vm11 = vmor %vm1732_vm10, %vm1733_vm7 }
 0x67c   : > { %v1725_v9 = vsel %vm1724_vm4, %v2652_v33, %v1721_v24  ;;  %v1728_v58 = vmul.f32 %v2654_v62, %v1727_v49  ;;  %v1982_v49 = vld [vmem:[#allocation4] sm:$0x3] }
 0x67d   : > { %v1778_v59 = vpack.c.bf16 %v1772_v63, %v1770_v0  ;;  %v1779_v28 = vpack.c.bf16 %v1773_v44, %v1771_v55  ;;  %v1740_v14 = vmul.f32 %v1725_v9, %v3411_v35  ;;  %v1741_v48 = vmul.f32 %v1725_v9, %v3413_v12 }
 0x67e   : > { %v1729_v34 = vmul.f32 0.5, %v1728_v58 }
 0x67f   : > { %1922 = vmatmul.bf16.vlgmr.msrb.gmra.mxu0 %v1778_v59  ;;  %1941 = vmatmul.bf16.vlgmr.msrb.gmra.mxu2 %v1779_v28  ;;  %v1753_v42 = vmul.f32 %v1745_v7, %v1740_v14  ;;  %v1754_v25 = vmul.f32 %v1746_v4, %v1741_v48 }
 0x680   : > { %v1730_v2 = vsub.f32 1.5, %v1729_v34 }
 0x681   : > { %v1766_v46 = vadd.f32 %v1758_v22, %v1753_v42  ;;  %v1767_v38 = vadd.f32 %v1759_v40, %v1754_v25 }
 0x682   : > { %v1731_v54 = vmul.f32 %v2654_v62, %v1730_v2 }
 0x683   : > { %v1774_v51 = vmax.f32 %v1766_v46, 0.0  ;;  %v1775_v32 = vmax.f32 %v1767_v38, 0.0 }
 0x684   : > { %v1735_v61 = vsel %vm1734_vm11, %v2654_v62, %v1731_v54 }
 0x685   : > { %v1742_v57 = vmul.f32 %v1735_v61, %v3420_v53  ;;  %v1743_v30 = vmul.f32 %v1735_v61, %v3422_v37  ;;  %v1956_v53 = vld [vmem:[%s3542_s9] sm:$0x1] }
 0x686   : > { %1985 = vxpose.xlu1.c.b16.start.end [1/1] (short) (narrow) %v1956_v53, 32 }
 0x687   : > { %v1755_v27 = vmul.f32 %v1745_v7, %v1742_v57  ;;  %v1756_v1 = vmul.f32 %v1746_v4, %v1743_v30 }
 0x689   : > { %v1768_v15 = vadd.f32 %v1758_v22, %v1755_v27  ;;  %v1769_v35 = vadd.f32 %v1759_v40, %v1756_v1 }
 0x68b   : > { %v1776_v12 = vmax.f32 %v1768_v15, 0.0  ;;  %v1777_v17 = vmax.f32 %v1769_v35, 0.0 }
 0x68d   : > { %v1780_v3 = vpack.c.bf16 %v1776_v12, %v1774_v51  ;;  %v1781_v47 = vpack.c.bf16 %v1777_v17, %v1775_v32 }
 0x68f   : > { %1927 = vmatmul.bf16.gmra.mxu0 %v1780_v3  ;;  %1946 = vmatmul.bf16.gmra.mxu2 %v1781_v47 }
 0x6e3   : > { %v1979_v13 = vpop.permute.xlu0 %1978 }
 0x6fc   : > { %v1923_v37 = vpop.f32.mrf.mxu0 }
 0x6fd   : > { %v1924_v36 = vadd.f32 %v2602_v31, %v1923_v37 }
 0x702   : > { %v1942_v10 = vpop.f32.mrf.mxu2 }
 0x703   : > { %v1943_v26 = vadd.f32 %v1942_v10, %v1924_v36 }
 0x704   : > { %v1925_v7 = vpop.f32.mrf.mxu0 }
 0x705   : > { %v1926_v20 = vadd.f32 %v2602_v31, %v1925_v7  ;;  %v1952_v62 = vadd.f32 %v2658_v60, %v1943_v26 }
 0x70a   : > { %v1944_v41 = vpop.f32.mrf.mxu2 }
 0x70b   : > { %v1945_v40 = vadd.f32 %v1944_v41, %v1926_v20 }
 0x70c   : > { %v1928_v23 = vpop.f32.mrf.mxu0 }
 0x70d   : > { %v1929_v45 = vadd.f32 %v2602_v31, %v1928_v23  ;;  %v1953_v50 = vadd.f32 %v2657_v6, %v1945_v40 }
 0x70f   : > { %v1957_v11 = vpack.c.bf16 %v1953_v50, %v1952_v62 }
 0x712   : > { %v1947_v4 = vpop.f32.mrf.mxu2 }
 0x713   : > { %v1948_v16 = vadd.f32 %v1947_v4, %v1929_v45 }
 0x714   : > { %v1930_v33 = vpop.f32.mrf.mxu0 }
 0x715   : > { %v1931_v22 = vadd.f32 %v2602_v31, %v1930_v33  ;;  %v1954_v39 = vadd.f32 %v2655_v5, %v1948_v16 }
 0x71a   : > { %v1949_v19 = vpop.f32.mrf.mxu2 }
 0x71b   : > { %v1950_v8 = vadd.f32 %v1949_v19, %v1931_v22 }
 0x71d   : > { %v1955_v43 = vadd.f32 %v2656_v56, %v1950_v8 }
 0x71f   : > { %v1958_v21 = vpack.c.bf16 %v1955_v43, %v1954_v39 }
 0x721   : > { %1968 = vmatpush.bf16.msra.mxu1 %v1958_v21 }
 0x725   : > { %1969 = vmatpush.bf16.msra.mxu1 %v1957_v11 }
 0x728   : > { %2511 = vmatmul.msk.bf16.vlgmr.msra.gmra.mxu1 %vm3614_vm1, %v1956_v53 }
 0x732   : > { %v1993_v58 = vpop.trf.xlu1 }
 0x742   : > { %v1994_v59 = vpop.trf.xlu1 }
 0x7a5   : > { %v1971_v24 = vpop.f32.mrf.mxu1 }
 0x7a6   : > { %v1981_v0 = vmul.f32 %v1979_v13, %v1971_v24 }
 0x7a8   : > { %v1983_v63 = vadd.f32 %v1982_v49, %v1981_v0 }
 0x7aa   : > { %v1984_v55 = vpack.c.bf16 %v1983_v63, %v1983_v63  ;;  %2039 = vst [vmem:[#allocation4] sm:$0x3] %v1983_v63 }
 0x7ac   : > { %v2010_v44 = vsel %vm2008_vm15, %v1984_v55, 0 }
 0x7ad   : > { %v1973_v9 = vpop.f32.mrf.mxu1  ;;  %2019 = vmatpush.bf16.msra.mxu3 %v2010_v44 }
 0x7b0   : > { %2512 = vmatmul.msk.bf16.vlgmr.msra.gmra.mxu3 %vm2001_vm0, %v1993_v58 }
 0x7c0   : > { %2513 = vmatmul.msk.bf16.gmra.mxu3 %vm2001_vm0, %v1994_v59 }
 0x833   : > { %v2021_v28 = vpop.f32.mrf.mxu3 }
 0x834   : > { %v2031_v34 = vadd.f32 %v2021_v28, %v1952_v62 }
 0x836   : > { %2035 = vst [vmem:[#allocation2 + $0x10] sm:$0xff] %v2031_v34 }
 0x83b   : > { %v2023_v14 = vpop.f32.mrf.mxu3 }
 0x83c   : > { %v2032_v48 = vadd.f32 %v2023_v14, %v1953_v50 }
 0x83e   : > { %2036 = vst [vmem:[#allocation2] sm:$0xff] %v2032_v48 }
 0x843   : > { %v2026_v2 = vpop.f32.mrf.mxu3 }
 0x844   : > { %v2033_v54 = vadd.f32 %v2026_v2, %v1954_v39 }
 0x846   : > { %2037 = vst [vmem:[#allocation2 + $0x18] sm:$0xff] %v2033_v54 }
 0x84a   : > { %2043 = sbr.rel (%p2514_p8) target bundleno = 2547 (0x9f3), region = 120 }
 0x84b   : > { %v2028_v42 = vpop.f32.mrf.mxu3 }
 0x84c   : > { %v2034_v25 = vadd.f32 %v2028_v42, %v1955_v43 }
 0x84e   : > { %2038 = vst [vmem:[#allocation2 + $0x8] sm:$0xff] %v2034_v25 }
 0x84f   : > { %v2046_v61 = vld [vmem:[#allocation2 + $0x18] sm:$0xff]  ;;  %v2044_v57 = vld [vmem:[#allocation2 + $0x10] sm:$0xff]  ;;  %v2045_v27 = vld [vmem:[#allocation2] sm:$0xff]  ;;  %v2734_v21 = vmov 0   ;;  %vm3619_vm11 = vcmask 261120  }
 0x850   : > { %2054 = vadd.xlane.f32.xlu0 %v2046_v61  ;;  %2050 = vadd.xlane.f32.xlu1 %v2044_v57  ;;  %v2167_v6 = vld [vmem:[%s3543_s10] sm:$0x3] }
 0x851   : > { %2659 = vset.pattern.permute.xlu2 %v2734_v21  ;;  %2660 = vset.pattern.permute.xlu0 %v2734_v21  ;;  %v2661_v34 = vld [vmem:[%s3617_s29] ss:$0 sm:$0xff] }
 0x855   : > { %v2047_v30 = vld [vmem:[#allocation2 + $0x8] sm:$0xff] }
 0x858   : > { %2056 = vadd.xlane.f32.xlu0 %v2047_v30  ;;  %2052 = vadd.xlane.f32.xlu1 %v2045_v27 }
 0x8c3   : > { %v2055_v46 = vpop.xlane.xlu0 %2054  ;;  %v2051_v1 = vpop.xlane.xlu1 %2050 }
 0x8c4   : > { %v2060_v38 = vmul.f32 %v2055_v46, %v2976_v52  ;;  %v2058_v15 = vmul.f32 %v2051_v1, %v2976_v52 }
 0x8c6   : > { %v3481_v35 = vsub.f32 %v2044_v57, %v2058_v15  ;;  %v3483_v51 = vsub.f32 %v2046_v61, %v2060_v38  ;;  %v2662_v61 = vld [vmem:[%s3618_s26] ss:$0 sm:$0xff] }
 0x8c8   : > { %v2068_v12 = vmul.f32 %v3483_v51, %v3483_v51  ;;  %v2066_v32 = vmul.f32 %v3481_v35, %v3481_v35 }
 0x8ca   : > { %2074 = vadd.xlane.f32.xlu2 %v2068_v12  ;;  %2070 = vadd.xlane.f32.xlu0 %v2066_v32 }
 0x8cb   : > { %v2057_v17 = vpop.xlane.xlu0 %2056  ;;  %v2053_v3 = vpop.xlane.xlu1 %2052 }
 0x8cc   : > { %v2061_v47 = vmul.f32 %v2057_v17, %v2976_v52  ;;  %v2059_v53 = vmul.f32 %v2053_v3, %v2976_v52 }
 0x8ce   : > { %v3491_v37 = vsub.f32 %v2047_v30, %v2061_v47  ;;  %v3493_v10 = vsub.f32 %v2045_v27, %v2059_v53 }
 0x8d0   : > { %v2069_v7 = vmul.f32 %v3491_v37, %v3491_v37  ;;  %v2067_v29 = vmul.f32 %v3493_v10, %v3493_v10 }
 0x8d2   : > { %2076 = vadd.xlane.f32.xlu2 %v2069_v7  ;;  %2072 = vadd.xlane.f32.xlu1 %v2067_v29 }
 0x8ea   : > { %2170 = vperm.xlu2 %2659, %v2167_v6  }
 0x93d   : > { %v2075_v18 = vpop.xlane.xlu2 %2074  ;;  %v2071_v41 = vpop.xlane.xlu0 %2070 }
 0x93e   : > { %v2080_v23 = vmul.f32 %v2075_v18, %v2976_v52  ;;  %v2078_v4 = vmul.f32 %v2071_v41, %v2976_v52 }
 0x940   : > { %v2084_v31 = vadd.f32 1e-05, %v2080_v23  ;;  %v2082_v33 = vadd.f32 1e-05, %v2078_v4 }
 0x942   : > { %2663 = vrsqrt.f32 %v2084_v31  ;;  %vm2112_vm9 = vweird.f32 %v2084_v31  ;;  %vm2092_vm6 = vweird.f32 %v2082_v33 }
 0x943   : > { %2665 = vrsqrt.f32 %v2082_v33 }
 0x945   : > { %v2077_v45 = vpop.xlane.xlu2 %2076  ;;  %v2073_v20 = vpop.xlane.xlu1 %2072 }
 0x946   : > { %v2081_v16 = vmul.f32 %v2077_v45, %v2976_v52  ;;  %v2079_v22 = vmul.f32 %v2073_v20, %v2976_v52 }
 0x948   : > { %v2664_v19 = vpop.eup %2663  ;;  %v2085_v36 = vadd.f32 1e-05, %v2081_v16  ;;  %v2083_v40 = vadd.f32 1e-05, %v2079_v22 }
 0x949   : > { %v2666_v8 = vpop.eup %2665  ;;  %v2107_v26 = vmul.f32 %v2664_v19, %v2084_v31  ;;  %vm2113_vm12 = vweird.f32 %v2664_v19 }
 0x94a   : > { %v2087_v5 = vmul.f32 %v2666_v8, %v2082_v33  ;;  %2667 = vrsqrt.f32 %v2085_v36  ;;  %vm2114_vm14 = vmor %vm2112_vm9, %vm2113_vm12  ;;  %vm2093_vm5 = vweird.f32 %v2666_v8  ;;  %vm2122_vm2 = vweird.f32 %v2085_v36 }
 0x94b   : > { %v2108_v39 = vmul.f32 %v2664_v19, %v2107_v26  ;;  %2669 = vrsqrt.f32 %v2083_v40  ;;  %vm3506_vm13 = vmor %vm2092_vm6, %vm2093_vm5  ;;  %vm2102_vm7 = vweird.f32 %v2083_v40 }
 0x94c   : > { %v2088_v56 = vmul.f32 %v2666_v8, %v2087_v5 }
 0x94d   : > { %v2109_v43 = vmul.f32 0.5, %v2108_v39 }
 0x94e   : > { %v2089_v50 = vmul.f32 0.5, %v2088_v56 }
 0x94f   : > { %v2110_v52 = vsub.f32 1.5, %v2109_v43 }
 0x950   : > { %v2668_v60 = vpop.eup %2667  ;;  %v2090_v62 = vsub.f32 1.5, %v2089_v50 }
 0x951   : > { %v2670_v11 = vpop.eup %2669  ;;  %v2111_v13 = vmul.f32 %v2664_v19, %v2110_v52  ;;  %v2117_v24 = vmul.f32 %v2668_v60, %v2085_v36  ;;  %vm2123_vm8 = vweird.f32 %v2668_v60 }
 0x952   : > { %v2097_v49 = vmul.f32 %v2670_v11, %v2083_v40  ;;  %v2091_v0 = vmul.f32 %v2666_v8, %v2090_v62  ;;  %vm2103_vm3 = vweird.f32 %v2670_v11  ;;  %vm2124_vm4 = vmor %vm2122_vm2, %vm2123_vm8 }
 0x953   : > { %v2118_v63 = vmul.f32 %v2668_v60, %v2117_v24  ;;  %v2115_v55 = vsel %vm2114_vm14, %v2664_v19, %v2111_v13  ;;  %vm2104_vm10 = vmor %vm2102_vm7, %vm2103_vm3 }
 0x954   : > { %v2098_v44 = vmul.f32 %v2670_v11, %v2097_v49  ;;  %v2128_v28 = vmul.f32 %v2115_v55, %v3483_v51  ;;  %v2095_v14 = vsel %vm3506_vm13, %v2666_v8, %v2091_v0 }
 0x955   : > { %v2119_v9 = vmul.f32 0.5, %v2118_v63  ;;  %v2126_v57 = vmul.f32 %v2095_v14, %v3481_v35 }
 0x956   : > { %v2099_v59 = vmul.f32 0.5, %v2098_v44  ;;  %v2135_v25 = vmul.f32 %v2661_v34, %v2128_v28 }
 0x957   : > { %v2120_v48 = vsub.f32 1.5, %v2119_v9  ;;  %v2133_v51 = vmul.f32 %v2661_v34, %v2126_v57 }
 0x958   : > { %v2100_v2 = vsub.f32 1.5, %v2099_v59  ;;  %v2142_v15 = vadd.f32 %v2662_v61, %v2135_v25 }
 0x959   : > { %v2121_v54 = vmul.f32 %v2668_v60, %v2120_v48  ;;  %v2140_v53 = vadd.f32 %v2662_v61, %v2133_v51 }
 0x95a   : > { %v2101_v42 = vmul.f32 %v2670_v11, %v2100_v2  ;;  %v2146_v3 = vmax.f32 %v2142_v15, 0.0 }
 0x95b   : > { %v2125_v30 = vsel %vm2124_vm4, %v2668_v60, %v2121_v54  ;;  %v2144_v35 = vmax.f32 %v2140_v53, 0.0 }
 0x95c   : > { %v2105_v27 = vsel %vm2104_vm10, %v2670_v11, %v2101_v42  ;;  %v2129_v46 = vmul.f32 %v2125_v30, %v3491_v37  ;;  %v2148_v37 = vld [vmem:[%s3542_s9] sm:$0x1] }
 0x95d   : > { %v2127_v1 = vmul.f32 %v2105_v27, %v3493_v10  ;;  %v2171_v10 = vpop.permute.xlu2 %2170 }
 0x95e   : > { %v2136_v38 = vmul.f32 %v2661_v34, %v2129_v46 }
 0x95f   : > { %v2134_v12 = vmul.f32 %v2661_v34, %v2127_v1 }
 0x960   : > { %v2143_v32 = vadd.f32 %v2662_v61, %v2136_v38 }
 0x961   : > { %v2141_v17 = vadd.f32 %v2662_v61, %v2134_v12 }
 0x962   : > { %v2147_v47 = vmax.f32 %v2143_v32, 0.0 }
 0x963   : > { %v2145_v29 = vmax.f32 %v2141_v17, 0.0 }
 0x964   : > { %v2150_v7 = vpack.c.bf16 %v2147_v47, %v2146_v3 }
 0x965   : > { %v2149_v18 = vpack.c.bf16 %v2145_v29, %v2144_v35 }
 0x966   : > { %2160 = vmatpush.bf16.msra.mxu0 %v2150_v7 }
 0x96a   : > { %2161 = vmatpush.bf16.msra.mxu0 %v2149_v18 }
 0x96d   : > { %2515 = vmatmul.msk.bf16.vlgmr.msra.gmra.mxu0 %vm3619_vm11, %v2148_v37 }
 0x9ea   : > { %v2163_v41 = vpop.f32.mrf.mxu0 }
 0x9eb   : > { %v2173_v23 = vmul.f32 %v2171_v10, %v2163_v41 }
 0x9ed   : > { %2174 = vst [vmem:[#allocation8] sm:$0x3] %v2173_v23 }
 0x9f2   : > { %v2165_v4 = vpop.f32.mrf.mxu0 }
 0x9f3 PF: > { %p2580_p9 = scmp.eq.s32.totalorder %s2857_s28, 1  ;;  %s2735_s11 = smov [#allocation8]  }
 0x9f4   : > { %s2181_s3 = sshll.u32 %s2735_s11, 4  ;;  %s3620_s6 = sld [smem:[#allocation23_spill]]  ;;  %s2182_s3 = int_to_ptr.vmem [resolvable:$true] %s2181_s3 }
 0x9fa   : > { %s2183_s15 = sshll.u32 %s3620_s6, 4  ;;  %s2184_s15 = int_to_ptr.hbm [resolvable:$true] %s2183_s15 }
 0x9fb   : > { %2571 = dma.vmem_to_hbm [thread:$0]  (%p2580_p9), %s2182_s3, 32, %s2184_s15, [#allocation6]  }
 0x9fc   : > { %2723 = dma.done.wait (%p2580_p9), [#allocation6], 32  }
 0x9fd   : > { %2725 = vsyncadd (%p2580_p9), [#allocation6], 4294967264 }
 0x9fe PF: > { %s3621_s23 = sld [smem:[#allocation11_spill]] }
 0xa04   : > { %s34_s3 = sadd.s32 1, %s3621_s23  }
 0xa05   : > { %p31_p10 = scmp.ge.s32.totalorder %s34_s3, 4  }
 0xa07   :  { %33 = sbr.rel (!%p31_p10) target bundleno = 15 (0xf), region = 169 }
 0xa0c   :  { %2197 = vsyncpa [#allocation6], 1 }
 0xa0d   :  { %2199 = vsyncpa [#allocation6 + $0x1], 1 }
 0xa0e   :  { %2200 = vsyncpa [#allocation7], 1 }
 0xa0f   :  { %2202 = vsyncpa [#allocation7 + $0x1], 1 }

</bundles_post_ra>
